<compile_context>
chip_gen: v7x
topology: tpu7x:2x2x1
jax: 0.10.0
libtpu: 0.0.40
codegen_flags: <defaults>
</compile_context>

<pallas_src>
import jax
import jax.numpy as jnp
from jax.experimental import pallas as pl
from jax.experimental.pallas import tpu as pltpu

IN_DIM = 82 * 20   # 1640 (PyTorch Flatten of (82, 20)); divisible by 8 -> legal block dim
HID = 512
OUT_DIM = 1
OUT_PAD = 128      # lane-dense fc3 output; the real output is column 0
TM_MAX = 1024      # f32 x tile: 1024*1640*4 B ~= 6.7 MiB (x2 buffers) -> fits 40 MiB limit


def _round_up(n, m):
    return ((n + m - 1) // m) * m


def _choose_tm(B):
    """Rows per batch tile."""
    if B <= 16:
        # Single tiny tile; block == full batch dim is always a legal block shape.
        return B
    # Prefer >= 2 grid steps (v7x has 2 TensorCores; megacore sharding on the parallel
    # axis), 16-row granularity (bf16 sublane packing), capped at TM_MAX for VMEM.
    return max(16, min(TM_MAX, _round_up(pl.cdiv(B, 2), 16)))


def mlp_kernel(x_ref, w1_ref, b1_ref, w2_ref, b2_ref, w3_ref, b3_ref, o_ref):
    # Cast the f32 activation tile to bf16 in VMEM (VPU work, hidden under the MXU).
    x = x_ref[...].astype(jnp.bfloat16)
    # fc1 + ReLU  (bf16 MXU operands, f32 accumulation, f32 bias add)
    h1 = jnp.dot(x, w1_ref[...], preferred_element_type=jnp.float32)
    h1 = jnp.maximum(h1 + b1_ref[...], 0.0).astype(jnp.bfloat16)
    # fc2 + ReLU
    h2 = jnp.dot(h1, w2_ref[...], preferred_element_type=jnp.float32)
    h2 = jnp.maximum(h2 + b2_ref[...], 0.0).astype(jnp.bfloat16)
    # fc3: lane-dense MXU dot against the zero-padded (512, 128) w3; column 0 is real.
    o = jnp.dot(h2, w3_ref[...], preferred_element_type=jnp.float32) + b3_ref[...]
    o_ref[...] = o.astype(o_ref.dtype)


def neural_network_forward(x, params):
    """x: (B, 82, 20) float32 -> (B, 1) float32."""
    w1, b1, w2, b2, w3, b3 = params
    B = x.shape[0]

    # Flatten is a free reshape; x stays f32 all the way into the kernel (no HBM prepass).
    x2d = x.reshape(B, IN_DIM)
    if x2d.dtype != jnp.float32:
        x2d = x2d.astype(jnp.float32)

    TM = _choose_tm(B)
    grid = (pl.cdiv(B, TM),)

    # Weights: bf16 for the MXU; w3/b3 zero-padded to a lane-dense 128-wide output.
    # TODO(synk): on v7x, fp8(e4m3) weights with per-channel scales would halve the
    # resident weight DMA for the latency-bound small-B case (needs an accuracy check).
    w1_p = w1.astype(jnp.bfloat16)                                     # (1640, 512)
    w2_p = w2.astype(jnp.bfloat16)                                     # (512, 512)
    w3_p = jnp.pad(w3.reshape(HID, OUT_DIM).astype(jnp.bfloat16),
                   ((0, 0), (0, OUT_PAD - OUT_DIM)))                   # (512, 128)
    b1_p = b1.reshape(1, HID).astype(jnp.float32)
    b2_p = b2.reshape(1, HID).astype(jnp.float32)
    b3_p = jnp.pad(b3.reshape(1, OUT_DIM).astype(jnp.float32),
                   ((0, 0), (0, OUT_PAD - OUT_DIM)))                   # (1, 128)

    out = pl.pallas_call(
        mlp_kernel,
        out_shape=jax.ShapeDtypeStruct((B, OUT_PAD), jnp.float32),
        grid=grid,
        in_specs=[
            pl.BlockSpec((TM, IN_DIM), lambda i: (i, 0)),      # x tile (pipelined, f32)
            pl.BlockSpec((IN_DIM, HID), lambda i: (0, 0)),     # w1 (VMEM-resident)
            pl.BlockSpec((1, HID), lambda i: (0, 0)),          # b1
            pl.BlockSpec((HID, HID), lambda i: (0, 0)),        # w2
            pl.BlockSpec((1, HID), lambda i: (0, 0)),          # b2
            pl.BlockSpec((HID, OUT_PAD), lambda i: (0, 0)),    # w3 (zero-padded cols)
            pl.BlockSpec((1, OUT_PAD), lambda i: (0, 0)),      # b3
        ],
        out_specs=pl.BlockSpec((TM, OUT_PAD), lambda i: (i, 0)),
        compiler_params=pltpu.CompilerParams(
            dimension_semantics=("parallel",),
            # ~13.4 MiB (x, 2-buf) + ~4.7 MiB (weights, 2-buf) + ~1 MiB (out, 2-buf)
            # + temporaries at TM=1024; 40 MiB gives headroom and stays well under
            # v7x's 64 MiB physical VMEM (v5e/v6e have 128 MiB).
            vmem_limit_bytes=40 << 20,
        ),
    )(x2d, w1_p, b1_p, w2_p, b2_p, w3_p, b3_p)

    return out[:, :OUT_DIM]   # drop the lane-padding columns -> (B, 1)


def init_params(key):
    """Deterministic init mirroring PyTorch nn.Linear default U(-1/sqrt(fan_in), +1/sqrt(fan_in)).
    Weights are stored transposed vs. PyTorch, i.e. (in_features, out_features)."""
    k = jax.random.split(key, 6)

    def lin(kw, kb, fan_in, fan_out):
        bound = 1.0 / jnp.sqrt(jnp.float32(fan_in))
        w = jax.random.uniform(kw, (fan_in, fan_out), jnp.float32, -bound, bound)
        b = jax.random.uniform(kb, (1, fan_out), jnp.float32, -bound, bound)
        return w, b

    w1, b1 = lin(k[0], k[1], IN_DIM, HID)
    w2, b2 = lin(k[2], k[3], HID, HID)
    w3, b3 = lin(k[4], k[5], HID, OUT_DIM)
    return (w1, b1, w2, b2, w3, b3)


if __name__ == "__main__":
    key = jax.random.PRNGKey(0)
    kx, kp = jax.random.split(key)

    B = 2
    x = jax.random.normal(kx, (B, 82, 20), dtype=jnp.float32)
    params = init_params(kp)

    y = neural_network_forward(x, params)
    y = jax.block_until_ready(y)
    assert y.shape == (B, OUT_DIM), y.shape

    # Reference: true f32 forward pass (PyTorch semantics), HIGHEST matmul precision.
    w1, b1, w2, b2, w3, b3 = params
    hi = jax.lax.Precision.HIGHEST
    xf = x.reshape(B, IN_DIM)
    h1 = jnp.maximum(jnp.dot(xf, w1, precision=hi) + b1, 0.0)
    h2 = jnp.maximum(jnp.dot(h1, w2, precision=hi) + b2, 0.0)
    ref = jnp.dot(h2, w3, precision=hi) + b3

    err = float(jnp.max(jnp.abs(y - ref)))
    assert jnp.allclose(y, ref, atol=2e-2, rtol=2e-2), err

    print("KERNEL_OK")
</pallas_src>

<mosaic_0001>
module attributes {stable_mosaic.version = 11 : i64} {
  func.func @mlp_kernel(%arg0: i32, %arg1: memref<2x1640xf32, #tpu.memory_space<vmem>>, %arg2: memref<1640x512xbf16, #tpu.memory_space<vmem>>, %arg3: memref<1x512xf32, #tpu.memory_space<vmem>>, %arg4: memref<512x512xbf16, #tpu.memory_space<vmem>>, %arg5: memref<1x512xf32, #tpu.memory_space<vmem>>, %arg6: memref<512x128xbf16, #tpu.memory_space<vmem>>, %arg7: memref<1x128xf32, #tpu.memory_space<vmem>>, %arg8: memref<2x128xf32, #tpu.memory_space<vmem>>) attributes {dimension_semantics = [#tpu.dimension_semantics<parallel>], iteration_bounds = array<i64: 1>, scalar_prefetch = 0 : i64, scratch_operands = 0 : i64, tpu.core_type = #tpu.core_type<tc>, window_params = [{transform_indices = @transform_0, window_bounds = array<i64: 2, 1640>}, {pipeline_mode = #tpu.pipeline_mode<synchronous>, transform_indices = @transform_1, window_bounds = array<i64: 1640, 512>}, {pipeline_mode = #tpu.pipeline_mode<synchronous>, transform_indices = @transform_2, window_bounds = array<i64: 1, 512>}, {pipeline_mode = #tpu.pipeline_mode<synchronous>, transform_indices = @transform_3, window_bounds = array<i64: 512, 512>}, {pipeline_mode = #tpu.pipeline_mode<synchronous>, transform_indices = @transform_4, window_bounds = array<i64: 1, 512>}, {pipeline_mode = #tpu.pipeline_mode<synchronous>, transform_indices = @transform_5, window_bounds = array<i64: 512, 128>}, {pipeline_mode = #tpu.pipeline_mode<synchronous>, transform_indices = @transform_6, window_bounds = array<i64: 1, 128>}, {transform_indices = @transform_7, window_bounds = array<i64: 2, 128>}]} {
    %c0 = arith.constant 0 : index
    %c0_0 = arith.constant 0 : index
    %0 = vector.load %arg1[%c0, %c0_0] : memref<2x1640xf32, #tpu.memory_space<vmem>>, vector<2x1640xf32>
    %1 = arith.truncf %0 : vector<2x1640xf32> to vector<2x1640xbf16>
    %c0_1 = arith.constant 0 : index
    %c0_2 = arith.constant 0 : index
    %2 = vector.load %arg2[%c0_1, %c0_2] : memref<1640x512xbf16, #tpu.memory_space<vmem>>, vector<1640x512xbf16>
    %cst = arith.constant dense<0.000000e+00> : vector<2x512xf32>
    %3 = tpu.matmul %1, %2, %cst {dimension_numbers = #tpu.dot_dimension_numbers<[1], [0], [0], [1], [0, 0, 1, 1], [], []>} : vector<2x1640xbf16>, vector<1640x512xbf16>, vector<2x512xf32> -> vector<2x512xf32>
    %c0_3 = arith.constant 0 : index
    %c0_4 = arith.constant 0 : index
    %4 = vector.load %arg3[%c0_3, %c0_4] : memref<1x512xf32, #tpu.memory_space<vmem>>, vector<1x512xf32>
    %5 = vector.broadcast %4 : vector<1x512xf32> to vector<2x512xf32>
    %6 = arith.addf %3, %5 : vector<2x512xf32>
    %cst_5 = arith.constant 0.000000e+00 : f32
    %7 = vector.broadcast %cst_5 : f32 to vector<2x512xf32>
    %8 = arith.maximumf %6, %7 : vector<2x512xf32>
    %9 = arith.truncf %8 : vector<2x512xf32> to vector<2x512xbf16>
    %c0_6 = arith.constant 0 : index
    %c0_7 = arith.constant 0 : index
    %10 = vector.load %arg4[%c0_6, %c0_7] : memref<512x512xbf16, #tpu.memory_space<vmem>>, vector<512x512xbf16>
    %cst_8 = arith.constant dense<0.000000e+00> : vector<2x512xf32>
    %11 = tpu.matmul %9, %10, %cst_8 {dimension_numbers = #tpu.dot_dimension_numbers<[1], [0], [0], [1], [0, 0, 1, 1], [], []>} : vector<2x512xbf16>, vector<512x512xbf16>, vector<2x512xf32> -> vector<2x512xf32>
    %c0_9 = arith.constant 0 : index
    %c0_10 = arith.constant 0 : index
    %12 = vector.load %arg5[%c0_9, %c0_10] : memref<1x512xf32, #tpu.memory_space<vmem>>, vector<1x512xf32>
    %13 = vector.broadcast %12 : vector<1x512xf32> to vector<2x512xf32>
    %14 = arith.addf %11, %13 : vector<2x512xf32>
    %cst_11 = arith.constant 0.000000e+00 : f32
    %15 = vector.broadcast %cst_11 : f32 to vector<2x512xf32>
    %16 = arith.maximumf %14, %15 : vector<2x512xf32>
    %17 = arith.truncf %16 : vector<2x512xf32> to vector<2x512xbf16>
    %c0_12 = arith.constant 0 : index
    %c0_13 = arith.constant 0 : index
    %18 = vector.load %arg6[%c0_12, %c0_13] : memref<512x128xbf16, #tpu.memory_space<vmem>>, vector<512x128xbf16>
    %cst_14 = arith.constant dense<0.000000e+00> : vector<2x128xf32>
    %19 = tpu.matmul %17, %18, %cst_14 {dimension_numbers = #tpu.dot_dimension_numbers<[1], [0], [0], [1], [0, 0, 1, 1], [], []>} : vector<2x512xbf16>, vector<512x128xbf16>, vector<2x128xf32> -> vector<2x128xf32>
    %c0_15 = arith.constant 0 : index
    %c0_16 = arith.constant 0 : index
    %20 = vector.load %arg7[%c0_15, %c0_16] : memref<1x128xf32, #tpu.memory_space<vmem>>, vector<1x128xf32>
    %21 = vector.broadcast %20 : vector<1x128xf32> to vector<2x128xf32>
    %22 = arith.addf %19, %21 : vector<2x128xf32>
    %c0_17 = arith.constant 0 : index
    %c0_18 = arith.constant 0 : index
    %23 = vector.load %arg8[%c0_17, %c0_18] : memref<2x128xf32, #tpu.memory_space<vmem>>, vector<2x128xf32>
    tpu.vector_store %arg8[%c0_17, %c0_18], %22 {strides = array<i32>} : memref<2x128xf32, #tpu.memory_space<vmem>>, vector<2x128xf32>,
    return
  }
  func.func @transform_0(%arg0: i32) -> (i32, i32) {
    %c0_i32 = arith.constant 0 : i32
    %c0_i32_0 = arith.constant 0 : i32
    return %arg0, %c0_i32 : i32, i32
  }
  func.func @transform_1(%arg0: i32) -> (i32, i32) {
    %c0_i32 = arith.constant 0 : i32
    %c0_i32_0 = arith.constant 0 : i32
    %c0_i32_1 = arith.constant 0 : i32
    return %c0_i32, %c0_i32_0 : i32, i32
  }
  func.func @transform_2(%arg0: i32) -> (i32, i32) {
    %c0_i32 = arith.constant 0 : i32
    %c0_i32_0 = arith.constant 0 : i32
    %c0_i32_1 = arith.constant 0 : i32
    return %c0_i32, %c0_i32_0 : i32, i32
  }
  func.func @transform_3(%arg0: i32) -> (i32, i32) {
    %c0_i32 = arith.constant 0 : i32
    %c0_i32_0 = arith.constant 0 : i32
    %c0_i32_1 = arith.constant 0 : i32
    return %c0_i32, %c0_i32_0 : i32, i32
  }
  func.func @transform_4(%arg0: i32) -> (i32, i32) {
    %c0_i32 = arith.constant 0 : i32
    %c0_i32_0 = arith.constant 0 : i32
    %c0_i32_1 = arith.constant 0 : i32
    return %c0_i32, %c0_i32_0 : i32, i32
  }
  func.func @transform_5(%arg0: i32) -> (i32, i32) {
    %c0_i32 = arith.constant 0 : i32
    %c0_i32_0 = arith.constant 0 : i32
    %c0_i32_1 = arith.constant 0 : i32
    return %c0_i32, %c0_i32_0 : i32, i32
  }
  func.func @transform_6(%arg0: i32) -> (i32, i32) {
    %c0_i32 = arith.constant 0 : i32
    %c0_i32_0 = arith.constant 0 : i32
    %c0_i32_1 = arith.constant 0 : i32
    return %c0_i32, %c0_i32_0 : i32, i32
  }
  func.func @transform_7(%arg0: i32) -> (i32, i32) {
    %c0_i32 = arith.constant 0 : i32
    %c0_i32_0 = arith.constant 0 : i32
    return %arg0, %c0_i32 : i32, i32
  }
}

</mosaic_0001>

<bundles_post_ra>
// kernel: tpu_custom_call.1
= control target key start
LH: loop header
LB: loop body
LE: loop exit
PB: predicated region body
PF: predicated region fallthrough
CT: control target
= control target key end

     0   :  { %12 = vsyncpa [#allocation3], 0  ;;  %s6571_s0 = inlined_call_operand.hbm [shape: f32[2,1640], index: 0, kind: input, shape index: {}]   ;;  %s6572_s1 = inlined_call_operand.hbm [shape: bf16[1640,512], index: 1, kind: input, shape index: {}]   ;;  %s6573_s2 = inlined_call_operand.hbm [shape: f32[1,512], index: 2, kind: input, shape index: {}]   ;;  %s6574_s3 = inlined_call_operand.hbm [shape: bf16[512,512], index: 3, kind: input, shape index: {}]   ;;  %s6575_s4 = inlined_call_operand.hbm [shape: f32[1,512], index: 4, kind: input, shape index: {}]   ;;  %s6576_s5 = inlined_call_operand.hbm [shape: bf16[512,128], index: 5, kind: input, shape index: {}]   ;;  %s6577_s6 = inlined_call_operand.hbm [shape: f32[1,128], index: 6, kind: input, shape index: {}]   ;;  %s6578_s7 = inlined_call_operand.hbm [shape: f32[2,128], index: 7, kind: output, shape index: {}]  }
   0x1   :  { %13 = vsyncpa [#allocation6], 0 }
   0x2   :  { %14 = vsyncpa [#allocation9], 0 }
   0x3   :  { %15 = vsyncpa [#allocation12], 0 }
   0x4   :  { %16 = vsyncpa [#allocation4], 0  ;;  %s6341_s24 = smov [#allocation5]   ;;  %s6155_s28 = scalar_lea.hbm %s6572_s1, 52480 }
   0x5   :  { %s32_s25 = sshll.u32 %s6341_s24, 4  ;;  %p6156_p0 = scmp.ne.s32.totalorder %s6572_s1, %s6155_s28  ;;  %s33_s25 = int_to_ptr.vmem [resolvable:$true] %s32_s25 }
   0x6   :  { %p6159_p1 = scmp.lt.u32.totalorder %s6155_s28, %s6572_s1 }
   0x8   :  { %p6161_p2 = pnand %p6159_p1, %p6156_p0 }
   0xa   :  { %6164 = shalt.err (!%p6161_p2)
}
   0xb   :  { %s6165_s10 = scalar_lea.vmem %s33_s25, 52480  ;;  %p6170_p4 = scmp.lt.s32.totalorder %s33_s25, %s33_s25 }
   0xc   :  { %p6166_p3 = scmp.ne.s32.totalorder %s33_s25, %s6165_s10  ;;  %p6171_p5 = scmp.lt.s32.totalorder %s6165_s10, %s6165_s10 }
   0xe   :  { %p6172_p6 = por %p6171_p5, %p6170_p4 }
  0x10   :  { %p6173_p7 = pnand %p6172_p6, %p6166_p3 }
  0x12   :  { %6176 = shalt.err (!%p6173_p7)
}
  0x13   :  { %s6342_s11 = smov 256   ;;  %s6343_s12 = smov 16  }
  0x14   :  { %38 = dma.hbm_to_vmem [thread:$0]  %s6572_s1, 52480, %s33_s25, [#allocation6], %s6342_s11, %s6342_s11, %s6343_s12  }
  0x15   :  { %s6344_s15 = smov [#allocation8]   ;;  %s6345_s17 = smov [#allocation11]  }
  0x16   :  { %s54_s16 = sshll.u32 %s6344_s15, 4  ;;  %s76_s18 = sshll.u32 %s6345_s17, 4  ;;  %s55_s16 = int_to_ptr.vmem [resolvable:$true] %s54_s16  ;;  %s77_s18 = int_to_ptr.vmem [resolvable:$true] %s76_s18 }
  0x17   :  { %s6177_s21 = scalar_lea.hbm %s6574_s3, 16384 }
  0x18   :  { %p6178_p8 = scmp.ne.s32.totalorder %s6574_s3, %s6177_s21  ;;  %p6181_p9 = scmp.lt.u32.totalorder %s6177_s21, %s6574_s3 }
  0x1a   :  { %p6183_p10 = pnand %p6181_p9, %p6178_p8 }
  0x1c   :  { %6186 = shalt.err (!%p6183_p10)
}
  0x1d   :  { %s6187_s1 = scalar_lea.vmem %s55_s16, 16384  ;;  %p6192_p12 = scmp.lt.s32.totalorder %s55_s16, %s55_s16 }
  0x1e   :  { %p6188_p11 = scmp.ne.s32.totalorder %s55_s16, %s6187_s1  ;;  %p6193_p13 = scmp.lt.s32.totalorder %s6187_s1, %s6187_s1 }
  0x20   :  { %p6194_p0 = por %p6193_p13, %p6192_p12 }
  0x22   :  { %p6195_p1 = pnand %p6194_p0, %p6188_p11 }
  0x24   :  { %6198 = shalt.err (!%p6195_p1)
}
  0x25   :  { %60 = dma.hbm_to_vmem [thread:$0]  %s6574_s3, 16384, %s55_s16, [#allocation9], %s6342_s11, %s6342_s11, %s6343_s12  }
  0x26   :  { %s6199_s30 = scalar_lea.hbm %s6576_s5, 4096 }
  0x27   :  { %p6200_p2 = scmp.ne.s32.totalorder %s6576_s5, %s6199_s30  ;;  %p6203_p3 = scmp.lt.u32.totalorder %s6199_s30, %s6576_s5 }
  0x29   :  { %p6205_p4 = pnand %p6203_p3, %p6200_p2 }
  0x2b   :  { %6208 = shalt.err (!%p6205_p4)
}
  0x2c   :  { %s6209_s14 = scalar_lea.vmem %s77_s18, 4096  ;;  %p6214_p6 = scmp.lt.s32.totalorder %s77_s18, %s77_s18 }
  0x2d   :  { %p6210_p5 = scmp.ne.s32.totalorder %s77_s18, %s6209_s14  ;;  %p6215_p7 = scmp.lt.s32.totalorder %s6209_s14, %s6209_s14 }
  0x2f   :  { %p6216_p8 = por %p6215_p7, %p6214_p6 }
  0x31   :  { %p6217_p9 = pnand %p6216_p8, %p6210_p5 }
  0x33   :  { %6220 = shalt.err (!%p6217_p9)
}
  0x34   :  { %s6346_s3 = smov 64   ;;  %s6347_s11 = smov 4  }
  0x35   :  { %82 = dma.hbm_to_vmem [thread:$0]  %s6576_s5, 4096, %s77_s18, [#allocation12], %s6346_s3, %s6346_s3, %s6347_s11  }
  0x36   :  { %s6348_s16 = smov [#allocation2]   ;;  %s6349_s19 = smov [#allocation7]  }
  0x37   :  { %s23_s17 = sshll.u32 %s6348_s16, 4  ;;  %s45_s20 = sshll.u32 %s6349_s19, 4  ;;  %s24_s17 = int_to_ptr.vmem [resolvable:$true] %s23_s17  ;;  %s46_s20 = int_to_ptr.vmem [resolvable:$true] %s45_s20 }
  0x38   :  { %s6221_s23 = scalar_lea.hbm %s6571_s0, 416 }
  0x39   :  { %p6222_p10 = scmp.ne.s32.totalorder %s6571_s0, %s6221_s23  ;;  %p6225_p11 = scmp.lt.u32.totalorder %s6221_s23, %s6571_s0 }
  0x3b   :  { %p6227_p12 = pnand %p6225_p11, %p6222_p10 }
  0x3d   :  { %6230 = shalt.err (!%p6227_p12)
}
  0x3e   :  { %s6231_s5 = scalar_lea.vmem %s24_s17, 416  ;;  %p6236_p0 = scmp.lt.s32.totalorder %s24_s17, %s24_s17 }
  0x3f   :  { %p6232_p13 = scmp.ne.s32.totalorder %s24_s17, %s6231_s5  ;;  %p6237_p1 = scmp.lt.s32.totalorder %s6231_s5, %s6231_s5 }
  0x41   :  { %p6238_p2 = por %p6237_p1, %p6236_p0 }
  0x43   :  { %p6239_p3 = pnand %p6238_p2, %p6232_p13 }
  0x45   :  { %6242 = shalt.err (!%p6239_p3)
}
  0x46   :  { %26 = dma.hbm_to_vmem [thread:$0]  %s6571_s0, 416, %s24_s17, [#allocation3]  }
  0x47   :  { %s6243_s30 = scalar_lea.hbm %s6573_s2, 64 }
  0x48   :  { %p6244_p4 = scmp.ne.s32.totalorder %s6573_s2, %s6243_s30  ;;  %p6247_p5 = scmp.lt.u32.totalorder %s6243_s30, %s6573_s2 }
  0x4a   :  { %p6249_p6 = pnand %p6247_p5, %p6244_p4 }
  0x4c   :  { %6252 = shalt.err (!%p6249_p6)
}
  0x4d   :  { %s6253_s14 = scalar_lea.vmem %s46_s20, 64  ;;  %p6258_p8 = scmp.lt.s32.totalorder %s46_s20, %s46_s20 }
  0x4e   :  { %p6254_p7 = scmp.ne.s32.totalorder %s46_s20, %s6253_s14  ;;  %p6259_p9 = scmp.lt.s32.totalorder %s6253_s14, %s6253_s14 }
  0x50   :  { %p6260_p10 = por %p6259_p9, %p6258_p8 }
  0x52   :  { %p6261_p11 = pnand %p6260_p10, %p6254_p7 }
  0x54   :  { %6264 = shalt.err (!%p6261_p11)
}
  0x55   :  { %48 = dma.hbm_to_vmem [thread:$0]  %s6573_s2, 64, %s46_s20, [#allocation6]  }
  0x56   :  { %s6350_s11 = smov [#allocation10]   ;;  %s6351_s15 = smov [#allocation13]  }
  0x57   :  { %s67_s12 = sshll.u32 %s6350_s11, 4  ;;  %s89_s16 = sshll.u32 %s6351_s15, 4  ;;  %s68_s12 = int_to_ptr.vmem [resolvable:$true] %s67_s12  ;;  %s90_s16 = int_to_ptr.vmem [resolvable:$true] %s89_s16 }
  0x58   :  { %s6265_s21 = scalar_lea.hbm %s6575_s4, 64 }
  0x59   :  { %p6266_p12 = scmp.ne.s32.totalorder %s6575_s4, %s6265_s21  ;;  %p6269_p13 = scmp.lt.u32.totalorder %s6265_s21, %s6575_s4 }
  0x5b   :  { %p6271_p0 = pnand %p6269_p13, %p6266_p12 }
  0x5d   :  { %6274 = shalt.err (!%p6271_p0)
}
  0x5e   :  { %s6275_s2 = scalar_lea.vmem %s68_s12, 64  ;;  %p6280_p2 = scmp.lt.s32.totalorder %s68_s12, %s68_s12 }
  0x5f   :  { %p6276_p1 = scmp.ne.s32.totalorder %s68_s12, %s6275_s2  ;;  %p6281_p3 = scmp.lt.s32.totalorder %s6275_s2, %s6275_s2 }
  0x61   :  { %p6282_p4 = por %p6281_p3, %p6280_p2 }
  0x63   :  { %p6283_p5 = pnand %p6282_p4, %p6276_p1 }
  0x65   :  { %6286 = shalt.err (!%p6283_p5)
}
  0x66   :  { %70 = dma.hbm_to_vmem [thread:$0]  %s6575_s4, 64, %s68_s12, [#allocation9]  }
  0x67   :  { %s6287_s18 = scalar_lea.hbm %s6577_s6, 16 }
  0x68   :  { %p6288_p6 = scmp.ne.s32.totalorder %s6577_s6, %s6287_s18  ;;  %p6291_p7 = scmp.lt.u32.totalorder %s6287_s18, %s6577_s6 }
  0x6a   :  { %p6293_p8 = pnand %p6291_p7, %p6288_p6 }
  0x6c   :  { %6296 = shalt.err (!%p6293_p8)
}
  0x6d   :  { %s6297_s8 = scalar_lea.vmem %s90_s16, 16  ;;  %s6301_s9 = scalar_lea.vmem %s90_s16, 32 }
  0x6e   :  { %p6298_p9 = scmp.ne.s32.totalorder %s90_s16, %s6297_s8  ;;  %p6302_p10 = scmp.lt.s32.totalorder %s90_s16, %s90_s16 }
  0x6f   :  { %p6303_p11 = scmp.lt.s32.totalorder %s6301_s9, %s6297_s8 }
  0x71   :  { %p6304_p12 = por %p6303_p11, %p6302_p10 }
  0x73   :  { %p6305_p13 = pnand %p6304_p12, %p6298_p9 }
  0x75   :  { %6308 = shalt.err (!%p6305_p13)
}
  0x76   :  { %92 = dma.hbm_to_vmem [thread:$0]  %s6577_s6, 16, %s90_s16, [#allocation12]  }
  0x77   :  { %6331 = dma.done.wait [#allocation3], 416  }
  0x78   :  { %6332 = vsyncadd [#allocation3], 4294966880 }
  0x79   :  { %6333 = dma.done.wait [#allocation6], 52544  }
  0x7a   :  { %6334 = vsyncadd [#allocation6], 4294914752 }
  0x7b   :  { %6335 = dma.done.wait [#allocation9], 16448  }
  0x7c   :  { %6336 = vsyncadd [#allocation9], 4294950848 }
  0x7d   :  { %6337 = dma.done.wait [#allocation12], 4112  }
  0x7e   :  { %6338 = vsyncadd [#allocation12], 4294963184  ;;  %v5312_v0 = vld [vmem:[#allocation5 + $0x4] ss:$16 sps:$4 sm:$0xff]   ;;  %v5314_v1 = vld [vmem:[#allocation5 + $0xc] ss:$16 sps:$4 sm:$0xff]   ;;  %v127_v38 = vlaneseq }
  0x7f   :  { %2706 = vmatprep.subr.bf16.mxu0 %v5312_v0  ;;  %v5316_v2 = vld [vmem:[#allocation5] ss:$16 sps:$4 sm:$0xff]   ;;  %v5317_v3 = vld [vmem:[#allocation5 + $0x8] ss:$16 sps:$4 sm:$0xff]   ;;  %2993 = vmatprep.subr.bf16.mxu1 %v5314_v1  ;;  %v5318_v4 = vld [vmem:[#allocation5 + $0x24] ss:$16 sps:$4 sm:$0xff]  }
  0x80   :  { %2707 = vmatpush1.bf16.msra.mxu0 %v5316_v2  ;;  %2994 = vmatpush1.bf16.msra.mxu1 %v5317_v3  ;;  %v5320_v5 = vld [vmem:[#allocation5 + $0x2c] ss:$16 sps:$4 sm:$0xff]   ;;  %v5322_v6 = vld [vmem:[#allocation5 + $0x20] ss:$16 sps:$4 sm:$0xff]   ;;  %v5323_v7 = vld [vmem:[#allocation5 + $0x28] ss:$16 sps:$4 sm:$0xff]  }
  0x81   :  { %2708 = vmatprep.subr.bf16.mxu0 %v5318_v4  ;;  %2995 = vmatprep.subr.bf16.mxu1 %v5320_v5  ;;  %v5324_v8 = vld [vmem:[#allocation5 + $0x44] ss:$16 sps:$4 sm:$0xff]   ;;  %v5326_v9 = vld [vmem:[#allocation5 + $0x4c] ss:$16 sps:$4 sm:$0xff]   ;;  %v5328_v10 = vld [vmem:[#allocation5 + $0x40] ss:$16 sps:$4 sm:$0xff]  }
  0x82   :  { %v5329_v11 = vld [vmem:[#allocation5 + $0x48] ss:$16 sps:$4 sm:$0xff]   ;;  %v5330_v12 = vld [vmem:[#allocation5 + $0x64] ss:$16 sps:$4 sm:$0xff]   ;;  %v5332_v13 = vld [vmem:[#allocation5 + $0x6c] ss:$16 sps:$4 sm:$0xff]  }
  0x83   :  { %v5334_v14 = vld [vmem:[#allocation5 + $0x60] ss:$16 sps:$4 sm:$0xff]   ;;  %v5335_v15 = vld [vmem:[#allocation5 + $0x68] ss:$16 sps:$4 sm:$0xff]   ;;  %v5336_v16 = vld [vmem:[#allocation5 + $0x84] ss:$16 sps:$4 sm:$0xff]  }
  0x84   :  { %2709 = vmatpush1.bf16.msra.mxu0 %v5322_v6  ;;  %2996 = vmatpush1.bf16.msra.mxu1 %v5323_v7  ;;  %v5338_v17 = vld [vmem:[#allocation5 + $0x8c] ss:$16 sps:$4 sm:$0xff]   ;;  %v5340_v18 = vld [vmem:[#allocation5 + $0x80] ss:$16 sps:$4 sm:$0xff]   ;;  %v5341_v19 = vld [vmem:[#allocation5 + $0x88] ss:$16 sps:$4 sm:$0xff]  }
  0x85   :  { %2710 = vmatprep.subr.bf16.mxu0 %v5324_v8  ;;  %2997 = vmatprep.subr.bf16.mxu1 %v5326_v9  ;;  %v5342_v20 = vld [vmem:[#allocation5 + $0xa4] ss:$16 sps:$4 sm:$0xff]   ;;  %v5344_v21 = vld [vmem:[#allocation5 + $0xac] ss:$16 sps:$4 sm:$0xff]   ;;  %v5346_v22 = vld [vmem:[#allocation5 + $0xa0] ss:$16 sps:$4 sm:$0xff]  }
  0x86   :  { %v5347_v23 = vld [vmem:[#allocation5 + $0xa8] ss:$16 sps:$4 sm:$0xff]   ;;  %v5348_v24 = vld [vmem:[#allocation5 + $0xc4] ss:$16 sps:$4 sm:$0xff]   ;;  %v5350_v25 = vld [vmem:[#allocation5 + $0xcc] ss:$16 sps:$4 sm:$0xff]  }
  0x87   :  { %v5352_v26 = vld [vmem:[#allocation5 + $0xc0] ss:$16 sps:$4 sm:$0xff]   ;;  %v5353_v27 = vld [vmem:[#allocation5 + $0xc8] ss:$16 sps:$4 sm:$0xff]   ;;  %v5354_v28 = vld [vmem:[#allocation5 + $0xe4] ss:$16 sps:$4 sm:$0xff]  }
  0x88   :  { %2711 = vmatpush1.bf16.msra.mxu0 %v5328_v10  ;;  %2998 = vmatpush1.bf16.msra.mxu1 %v5329_v11  ;;  %v5356_v29 = vld [vmem:[#allocation5 + $0xec] ss:$16 sps:$4 sm:$0xff]   ;;  %v5358_v30 = vld [vmem:[#allocation5 + $0xe0] ss:$16 sps:$4 sm:$0xff]   ;;  %v5359_v31 = vld [vmem:[#allocation5 + $0xe8] ss:$16 sps:$4 sm:$0xff]  }
  0x89   :  { %2712 = vmatprep.subr.bf16.mxu0 %v5330_v12  ;;  %2999 = vmatprep.subr.bf16.mxu1 %v5332_v13  ;;  %v5360_v32 = vld [vmem:[#allocation5 + $0x104] ss:$16 sps:$4 sm:$0xff]   ;;  %v5362_v33 = vld [vmem:[#allocation5 + $0x10c] ss:$16 sps:$4 sm:$0xff]   ;;  %v5364_v34 = vld [vmem:[#allocation5 + $0x100] ss:$16 sps:$4 sm:$0xff]  }
  0x8a   :  { %v5365_v35 = vld [vmem:[#allocation5 + $0x108] ss:$16 sps:$4 sm:$0xff]   ;;  %v6352_v36 = vmov 1983009808   ;;  %v5366_v39 = vld [vmem:[#allocation5 + $0x124] ss:$16 sps:$4 sm:$0xff]  }
  0x8b   :  { %v125_v37 = vunpack.c.l.s4 %v6352_v36  ;;  %v5368_v40 = vld [vmem:[#allocation5 + $0x12c] ss:$16 sps:$4 sm:$0xff]   ;;  %v5370_v41 = vld [vmem:[#allocation5 + $0x120] ss:$16 sps:$4 sm:$0xff]   ;;  %v6479_v43 = vshrl.u32 %v127_v38, 7  ;;  %vm2693_vm0 = vcmask 1043456  }
  0x8c   :  { %2713 = vmatpush1.bf16.msra.mxu0 %v5334_v14  ;;  %3000 = vmatpush1.bf16.msra.mxu1 %v5335_v15  ;;  %v5371_v44 = vld [vmem:[#allocation5 + $0x128] ss:$16 sps:$4 sm:$0xff]   ;;  %v5372_v45 = vld [vmem:[#allocation5 + $0x144] ss:$16 sps:$4 sm:$0xff]   ;;  %v5374_v46 = vld [vmem:[#allocation5 + $0x14c] ss:$16 sps:$4 sm:$0xff]  }
  0x8d   :  { %2714 = vmatprep.subr.bf16.mxu0 %v5336_v16  ;;  %3001 = vmatprep.subr.bf16.mxu1 %v5338_v17  ;;  %v126_v42 = vunpack.c.0.s8 %v125_v37  ;;  %v5376_v47 = vld [vmem:[#allocation5 + $0x140] ss:$16 sps:$4 sm:$0xff]   ;;  %v5377_v48 = vld [vmem:[#allocation5 + $0x148] ss:$16 sps:$4 sm:$0xff]   ;;  %v5378_v50 = vld [vmem:[#allocation5 + $0x164] ss:$16 sps:$4 sm:$0xff]  }
  0x8e   :  { %v5380_v51 = vld [vmem:[#allocation5 + $0x16c] ss:$16 sps:$4 sm:$0xff]   ;;  %v5382_v53 = vld [vmem:[#allocation5 + $0x160] ss:$16 sps:$4 sm:$0xff]   ;;  %v5383_v55 = vld [vmem:[#allocation5 + $0x168] ss:$16 sps:$4 sm:$0xff]  }
  0x8f   :  { %v6482_v49 = vsub.s32 %v126_v42, %v6479_v43  ;;  %v115_v52 = vld [vmem:[#allocation2] sm:$0xff]  ;;  %v5388_v59 = vld [vmem:[#allocation5 + $0x180] ss:$16 sps:$4 sm:$0xff]   ;;  %vm2689_vm1 = vcmask 850944   ;;  %s6354_s6 = smov [#allocation14]  }
  0x90   :  { %2715 = vmatpush1.bf16.msra.mxu0 %v5340_v18  ;;  %3002 = vmatpush1.bf16.msra.mxu1 %v5341_v19  ;;  %v5384_v56 = vld [vmem:[#allocation5 + $0x184] ss:$16 sps:$4 sm:$0xff]   ;;  %v5386_v57 = vld [vmem:[#allocation5 + $0x18c] ss:$16 sps:$4 sm:$0xff]   ;;  %v5389_v61 = vld [vmem:[#allocation5 + $0x188] ss:$16 sps:$4 sm:$0xff]   ;;  %v123_v4 = vcombine.high %v115_v52, %v115_v52 }
  0x91   :  { %2716 = vmatprep.subr.bf16.mxu0 %v5342_v20  ;;  %3003 = vmatprep.subr.bf16.mxu1 %v5344_v21  ;;  %v130_v54 = vrot.slane %v115_v52, %v6482_v49  ;;  %v5390_v62 = vld [vmem:[#allocation5 + $0x1a4] ss:$16 sps:$4 sm:$0xff]   ;;  %v5392_v63 = vld [vmem:[#allocation5 + $0x1ac] ss:$16 sps:$4 sm:$0xff]   ;;  %v5394_v0 = vld [vmem:[#allocation5 + $0x1a0] ss:$16 sps:$4 sm:$0xff]  }
  0x92   :  { %v5395_v1 = vld [vmem:[#allocation5 + $0x1a8] ss:$16 sps:$4 sm:$0xff]   ;;  %v5396_v2 = vld [vmem:[#allocation5 + $0x1c4] ss:$16 sps:$4 sm:$0xff]   ;;  %v5398_v3 = vld [vmem:[#allocation5 + $0x1cc] ss:$16 sps:$4 sm:$0xff]   ;;  %v6486_v9 = vrot.slane %v123_v4, %v6482_v49 }
  0x93   :  { %v138_v58 = vcombine.high %v130_v54, %v130_v54  ;;  %v5400_v5 = vld [vmem:[#allocation5 + $0x1c0] ss:$16 sps:$4 sm:$0xff]   ;;  %v5401_v6 = vld [vmem:[#allocation5 + $0x1c8] ss:$16 sps:$4 sm:$0xff]   ;;  %v5402_v7 = vld [vmem:[#allocation5 + $0x1e4] ss:$16 sps:$4 sm:$0xff]   ;;  %v194_v16 = vpack.c.bf16 %v130_v54, %v130_v54 }
  0x94   :  { %2717 = vmatpush1.bf16.msra.mxu0 %v5346_v22  ;;  %3004 = vmatpush1.bf16.msra.mxu1 %v5347_v23  ;;  %v5404_v8 = vld [vmem:[#allocation5 + $0x1ec] ss:$16 sps:$4 sm:$0xff]   ;;  %v5406_v10 = vld [vmem:[#allocation5 + $0x1e0] ss:$16 sps:$4 sm:$0xff]   ;;  %v5407_v11 = vld [vmem:[#allocation5 + $0x1e8] ss:$16 sps:$4 sm:$0xff]   ;;  %v139_v14 = vcombine.high %v6486_v9, %v6486_v9 }
  0x95   :  { %2718 = vmatprep.subr.bf16.mxu0 %v5348_v24  ;;  %3005 = vmatprep.subr.bf16.mxu1 %v5350_v25  ;;  %v195_v60 = vpack.c.bf16 %v138_v58, %v138_v58  ;;  %v5411_v12 = vld [vmem:[#allocation5 + $0x204] ss:$16 sps:$4 sm:$0xff]   ;;  %v5414_v13 = vld [vmem:[#allocation5 + $0x20c] ss:$16 sps:$4 sm:$0xff]   ;;  %v5409_v15 = vld [vmem:[#allocation5 + $0x200] ss:$16 sps:$4 sm:$0xff]  }
  0x96   :  { %v5412_v17 = vld [vmem:[#allocation5 + $0x208] ss:$16 sps:$4 sm:$0xff]   ;;  %v5417_v18 = vld [vmem:[#allocation5 + $0x224] ss:$16 sps:$4 sm:$0xff]   ;;  %v5420_v19 = vld [vmem:[#allocation5 + $0x22c] ss:$16 sps:$4 sm:$0xff]   ;;  %v197_v20 = vpack.c.bf16 %v139_v14, %v139_v14 }
  0x97   :  { %2738 = vmatprep.mubr.bf16.mxu0 %v195_v60  ;;  %3025 = vmatprep.mubr.bf16.mxu1 %v195_v60  ;;  %v5415_v21 = vld [vmem:[#allocation5 + $0x220] ss:$16 sps:$4 sm:$0xff]   ;;  %v5418_v22 = vld [vmem:[#allocation5 + $0x228] ss:$16 sps:$4 sm:$0xff]   ;;  %v5423_v23 = vld [vmem:[#allocation5 + $0x244] ss:$16 sps:$4 sm:$0xff]  }
  0x98   :  { %2719 = vmatpush1.bf16.msra.mxu0 %v5352_v26  ;;  %3006 = vmatpush1.bf16.msra.mxu1 %v5353_v27  ;;  %v5426_v24 = vld [vmem:[#allocation5 + $0x24c] ss:$16 sps:$4 sm:$0xff]   ;;  %v5421_v25 = vld [vmem:[#allocation5 + $0x240] ss:$16 sps:$4 sm:$0xff]   ;;  %v5424_v26 = vld [vmem:[#allocation5 + $0x248] ss:$16 sps:$4 sm:$0xff]  }
  0x99   :  { %2720 = vmatprep.subr.bf16.mxu0 %v5354_v28  ;;  %3007 = vmatprep.subr.bf16.mxu1 %v5356_v29  ;;  %v5429_v27 = vld [vmem:[#allocation5 + $0x264] ss:$16 sps:$4 sm:$0xff]   ;;  %v5432_v28 = vld [vmem:[#allocation5 + $0x26c] ss:$16 sps:$4 sm:$0xff]   ;;  %v5427_v29 = vld [vmem:[#allocation5 + $0x260] ss:$16 sps:$4 sm:$0xff]  }
  0x9a   :  { %v5444_v36 = vld [vmem:[#allocation5 + $0x2ac] ss:$16 sps:$4 sm:$0xff]   ;;  %v5439_v37 = vld [vmem:[#allocation5 + $0x2a0] ss:$16 sps:$4 sm:$0xff]   ;;  %v5442_v38 = vld [vmem:[#allocation5 + $0x2a8] ss:$16 sps:$4 sm:$0xff]  }
  0x9b   :  { %v5448_v42 = vld [vmem:[#allocation5 + $0x2c8] ss:$16 sps:$4 sm:$0xff]   ;;  %v5468_v54 = vld [vmem:[#allocation5 + $0x32c] ss:$16 sps:$4 sm:$0xff]   ;;  %v5501_v14 = vld [vmem:[#allocation5 + $0x3e4] ss:$16 sps:$4 sm:$0xff]  }
  0x9c   :  { %2721 = vmatpush1.bf16.msra.mxu0 %v5358_v30  ;;  %3008 = vmatpush1.bf16.msra.mxu1 %v5359_v31  ;;  %v5430_v30 = vld [vmem:[#allocation5 + $0x268] ss:$16 sps:$4 sm:$0xff]   ;;  %v5435_v31 = vld [vmem:[#allocation5 + $0x284] ss:$16 sps:$4 sm:$0xff]   ;;  %v5474_v58 = vld [vmem:[#allocation5 + $0x34c] ss:$16 sps:$4 sm:$0xff]  }
  0x9d   :  { %2722 = vmatprep.subr.bf16.mxu0 %v5360_v32  ;;  %3009 = vmatprep.subr.bf16.mxu1 %v5362_v33  ;;  %v5438_v32 = vld [vmem:[#allocation5 + $0x28c] ss:$16 sps:$4 sm:$0xff]   ;;  %v5433_v33 = vld [vmem:[#allocation5 + $0x280] ss:$16 sps:$4 sm:$0xff]   ;;  %v5460_v52 = vld [vmem:[#allocation5 + $0x308] ss:$16 sps:$4 sm:$0xff]  }
  0x9e   :  { %v5472_v60 = vld [vmem:[#allocation5 + $0x348] ss:$16 sps:$4 sm:$0xff]   ;;  %s4600_s13 = sshll.u32 %s6354_s6, 4  ;;  %s4601_s13 = int_to_ptr.vmem [resolvable:$true] %s4600_s13 }
  0x9f   :  { %v5484_v4 = vld [vmem:[#allocation5 + $0x388] ss:$16 sps:$4 sm:$0xff]   ;;  %s6309_s14 = scalar_lea.vmem %s4601_s13, 32  ;;  %p6314_p1 = scmp.lt.s32.totalorder %s4601_s13, %s4601_s13 }
  0xa0   :  { %2723 = vmatpush1.bf16.msra.mxu0 %v5364_v34  ;;  %3010 = vmatpush1.bf16.msra.mxu1 %v5365_v35  ;;  %v5436_v34 = vld [vmem:[#allocation5 + $0x288] ss:$16 sps:$4 sm:$0xff]   ;;  %v5441_v35 = vld [vmem:[#allocation5 + $0x2a4] ss:$16 sps:$4 sm:$0xff]   ;;  %p6310_p0 = scmp.ne.s32.totalorder %s4601_s13, %s6309_s14  ;;  %p6315_p2 = scmp.lt.s32.totalorder %s6309_s14, %s6309_s14 }
  0xa1   :  { %2724 = vmatprep.subr.bf16.mxu0 %v5366_v39  ;;  %3011 = vmatprep.subr.bf16.mxu1 %v5368_v40  ;;  %v5447_v39 = vld [vmem:[#allocation5 + $0x2c4] ss:$16 sps:$4 sm:$0xff]   ;;  %v5450_v40 = vld [vmem:[#allocation5 + $0x2cc] ss:$16 sps:$4 sm:$0xff]  }
  0xa2   :  { %p6316_p3 = por %p6315_p2, %p6314_p1 }
  0xa4   :  { %2725 = vmatpush1.bf16.msra.mxu0 %v5370_v41  ;;  %3012 = vmatpush1.bf16.msra.mxu1 %v5371_v44  ;;  %v5445_v41 = vld [vmem:[#allocation5 + $0x2c0] ss:$16 sps:$4 sm:$0xff]   ;;  %v5453_v44 = vld [vmem:[#allocation5 + $0x2e4] ss:$16 sps:$4 sm:$0xff]   ;;  %p6317_p4 = pnand %p6316_p3, %p6310_p0 }
  0xa5   :  { %2726 = vmatprep.subr.bf16.mxu0 %v5372_v45  ;;  %3013 = vmatprep.subr.bf16.mxu1 %v5374_v46  ;;  %v5456_v45 = vld [vmem:[#allocation5 + $0x2ec] ss:$16 sps:$4 sm:$0xff]   ;;  %v5451_v46 = vld [vmem:[#allocation5 + $0x2e0] ss:$16 sps:$4 sm:$0xff]  }
  0xa8   :  { %2727 = vmatpush1.bf16.msra.mxu0 %v5376_v47  ;;  %3014 = vmatpush1.bf16.msra.mxu1 %v5377_v48  ;;  %v5454_v47 = vld [vmem:[#allocation5 + $0x2e8] ss:$16 sps:$4 sm:$0xff]   ;;  %v5459_v48 = vld [vmem:[#allocation5 + $0x304] ss:$16 sps:$4 sm:$0xff]  }
  0xa9   :  { %2728 = vmatprep.subr.bf16.mxu0 %v5378_v50  ;;  %3015 = vmatprep.subr.bf16.mxu1 %v5380_v51  ;;  %v5462_v50 = vld [vmem:[#allocation5 + $0x30c] ss:$16 sps:$4 sm:$0xff]   ;;  %v5457_v51 = vld [vmem:[#allocation5 + $0x300] ss:$16 sps:$4 sm:$0xff]  }
  0xac   :  { %2729 = vmatpush1.bf16.msra.mxu0 %v5382_v53  ;;  %3016 = vmatpush1.bf16.msra.mxu1 %v5383_v55  ;;  %v5465_v53 = vld [vmem:[#allocation5 + $0x324] ss:$16 sps:$4 sm:$0xff]   ;;  %v5463_v55 = vld [vmem:[#allocation5 + $0x320] ss:$16 sps:$4 sm:$0xff]  }
  0xad   :  { %2730 = vmatprep.subr.bf16.mxu0 %v5384_v56  ;;  %3017 = vmatprep.subr.bf16.mxu1 %v5386_v57  ;;  %v5466_v56 = vld [vmem:[#allocation5 + $0x328] ss:$16 sps:$4 sm:$0xff]   ;;  %v5471_v57 = vld [vmem:[#allocation5 + $0x344] ss:$16 sps:$4 sm:$0xff]  }
  0xb0   :  { %2731 = vmatpush1.bf16.msra.mxu0 %v5388_v59  ;;  %3018 = vmatpush1.bf16.msra.mxu1 %v5389_v61  ;;  %v5469_v59 = vld [vmem:[#allocation5 + $0x340] ss:$16 sps:$4 sm:$0xff]   ;;  %v5477_v61 = vld [vmem:[#allocation5 + $0x364] ss:$16 sps:$4 sm:$0xff]  }
  0xb1   :  { %2732 = vmatprep.subr.bf16.mxu0 %v5390_v62  ;;  %3019 = vmatprep.subr.bf16.mxu1 %v5392_v63  ;;  %v5480_v62 = vld [vmem:[#allocation5 + $0x36c] ss:$16 sps:$4 sm:$0xff]   ;;  %v5475_v63 = vld [vmem:[#allocation5 + $0x360] ss:$16 sps:$4 sm:$0xff]  }
  0xb4   :  { %2733 = vmatpush1.bf16.msra.mxu0 %v5394_v0  ;;  %3020 = vmatpush1.bf16.msra.mxu1 %v5395_v1  ;;  %v5478_v0 = vld [vmem:[#allocation5 + $0x368] ss:$16 sps:$4 sm:$0xff]   ;;  %v5483_v1 = vld [vmem:[#allocation5 + $0x384] ss:$16 sps:$4 sm:$0xff]  }
  0xb5   :  { %2734 = vmatprep.subr.bf16.mxu0 %v5396_v2  ;;  %3021 = vmatprep.subr.bf16.mxu1 %v5398_v3  ;;  %v5486_v2 = vld [vmem:[#allocation5 + $0x38c] ss:$16 sps:$4 sm:$0xff]   ;;  %v5481_v3 = vld [vmem:[#allocation5 + $0x380] ss:$16 sps:$4 sm:$0xff]  }
  0xb8   :  { %2735 = vmatpush1.bf16.msra.mxu0 %v5400_v5  ;;  %3022 = vmatpush1.bf16.msra.mxu1 %v5401_v6  ;;  %v5489_v5 = vld [vmem:[#allocation5 + $0x3a4] ss:$16 sps:$4 sm:$0xff]   ;;  %v5492_v6 = vld [vmem:[#allocation5 + $0x3ac] ss:$16 sps:$4 sm:$0xff]  }
  0xb9   :  { %2736 = vmatprep.subr.bf16.mxu0 %v5402_v7  ;;  %3023 = vmatprep.subr.bf16.mxu1 %v5404_v8  ;;  %v5487_v7 = vld [vmem:[#allocation5 + $0x3a0] ss:$16 sps:$4 sm:$0xff]   ;;  %v5490_v8 = vld [vmem:[#allocation5 + $0x3a8] ss:$16 sps:$4 sm:$0xff]  }
  0xbc   :  { %2737 = vmatpush1.bf16.msra.mxu0 %v5406_v10  ;;  %3024 = vmatpush1.bf16.msra.mxu1 %v5407_v11  ;;  %v5495_v10 = vld [vmem:[#allocation5 + $0x3c4] ss:$16 sps:$4 sm:$0xff]   ;;  %v5498_v11 = vld [vmem:[#allocation5 + $0x3cc] ss:$16 sps:$4 sm:$0xff]  }
  0xbd   :  { %2747 = vmatprep.subr.bf16.mxu0 %v5411_v12  ;;  %3034 = vmatprep.subr.bf16.mxu1 %v5414_v13  ;;  %v5493_v12 = vld [vmem:[#allocation5 + $0x3c0] ss:$16 sps:$4 sm:$0xff]   ;;  %v5496_v13 = vld [vmem:[#allocation5 + $0x3c8] ss:$16 sps:$4 sm:$0xff]  }
  0xbf   :  { %2739 = vmatmul.mubr.bf16.vlgmr.msra.gmra.mrb[0].mxu0 %v194_v16  ;;  %3026 = vmatmul.mubr.bf16.vlgmr.msra.gmra.mrb[0].mxu1 %v194_v16  ;;  %v5499_v16 = vld [vmem:[#allocation5 + $0x3e0] ss:$16 sps:$4 sm:$0xff]  }
  0xc0   :  { %2748 = vmatpush1.bf16.msra.mxu0 %v5409_v15  ;;  %3035 = vmatpush1.bf16.msra.mxu1 %v5412_v17  ;;  %v5504_v15 = vld [vmem:[#allocation5 + $0x3ec] ss:$16 sps:$4 sm:$0xff]   ;;  %v5502_v17 = vld [vmem:[#allocation5 + $0x3e8] ss:$16 sps:$4 sm:$0xff]  }
  0xc1   :  { %2749 = vmatprep.subr.bf16.mxu0 %v5417_v18  ;;  %3036 = vmatprep.subr.bf16.mxu1 %v5420_v19  ;;  %v5507_v18 = vld [vmem:[#allocation5 + $0x404] ss:$16 sps:$4 sm:$0xff]   ;;  %v5510_v19 = vld [vmem:[#allocation5 + $0x40c] ss:$16 sps:$4 sm:$0xff]  }
  0xc2   :  { %2779 = vmatprep.mubr.bf16.mxu0 %v197_v20  ;;  %3066 = vmatprep.mubr.bf16.mxu1 %v197_v20  ;;  %v5505_v20 = vld [vmem:[#allocation5 + $0x400] ss:$16 sps:$4 sm:$0xff]  }
  0xc4   :  { %2750 = vmatpush1.bf16.msra.mxu0 %v5415_v21  ;;  %3037 = vmatpush1.bf16.msra.mxu1 %v5418_v22  ;;  %v196_v21 = vpack.c.bf16 %v6486_v9, %v6486_v9  ;;  %v5508_v22 = vld [vmem:[#allocation5 + $0x408] ss:$16 sps:$4 sm:$0xff]   ;;  %v5511_v9 = vld [vmem:[#allocation5 + $0x420] ss:$16 sps:$4 sm:$0xff]  }
  0xc5   :  { %2751 = vmatprep.subr.bf16.mxu0 %v5423_v23  ;;  %3038 = vmatprep.subr.bf16.mxu1 %v5426_v24  ;;  %v6492_v23 = vld [vmem:[#allocation2 + $0x8] sm:$0xff] }
  0xc6   :  { %v5513_v24 = vld [vmem:[#allocation5 + $0x424] ss:$16 sps:$4 sm:$0xff]  }
  0xc8   :  { %2752 = vmatpush1.bf16.msra.mxu0 %v5421_v25  ;;  %3039 = vmatpush1.bf16.msra.mxu1 %v5424_v26  ;;  %v5516_v25 = vld [vmem:[#allocation5 + $0x42c] ss:$16 sps:$4 sm:$0xff]   ;;  %v6496_v26 = vrot.slane %v6492_v23, %v6482_v49 }
  0xc9   :  { %2753 = vmatprep.subr.bf16.mxu0 %v5429_v27  ;;  %3040 = vmatprep.subr.bf16.mxu1 %v5432_v28  ;;  %v5514_v28 = vld [vmem:[#allocation5 + $0x428] ss:$16 sps:$4 sm:$0xff]  }
  0xca   :  { %v155_v27 = vcombine.high %v6496_v26, %v6496_v26 }
  0xcc   :  { %2754 = vmatpush1.bf16.msra.mxu0 %v5427_v29  ;;  %3041 = vmatpush1.bf16.msra.mxu1 %v5430_v30  ;;  %v5519_v29 = vld [vmem:[#allocation5 + $0x444] ss:$16 sps:$4 sm:$0xff]   ;;  %v5522_v30 = vld [vmem:[#allocation5 + $0x44c] ss:$16 sps:$4 sm:$0xff]  }
  0xcd   :  { %2755 = vmatprep.subr.bf16.mxu0 %v5435_v31  ;;  %3042 = vmatprep.subr.bf16.mxu1 %v5438_v32  ;;  %v199_v31 = vpack.c.bf16 %v155_v27, %v155_v27  ;;  %v5517_v32 = vld [vmem:[#allocation5 + $0x440] ss:$16 sps:$4 sm:$0xff]  }
  0xce   :  { %v5595_v27 = vld [vmem:[#allocation5 + $0x5e0] ss:$16 sps:$4 sm:$0xff]  }
  0xd0   :  { %2756 = vmatpush1.bf16.msra.mxu0 %v5433_v33  ;;  %3043 = vmatpush1.bf16.msra.mxu1 %v5436_v34  ;;  %v5520_v33 = vld [vmem:[#allocation5 + $0x448] ss:$16 sps:$4 sm:$0xff]   ;;  %v5525_v34 = vld [vmem:[#allocation5 + $0x464] ss:$16 sps:$4 sm:$0xff]  }
  0xd1   :  { %2757 = vmatprep.subr.bf16.mxu0 %v5441_v35  ;;  %3044 = vmatprep.subr.bf16.mxu1 %v5444_v36  ;;  %v5528_v35 = vld [vmem:[#allocation5 + $0x46c] ss:$16 sps:$4 sm:$0xff]   ;;  %v5523_v36 = vld [vmem:[#allocation5 + $0x460] ss:$16 sps:$4 sm:$0xff]  }
  0xd4   :  { %2758 = vmatpush1.bf16.msra.mxu0 %v5439_v37  ;;  %3045 = vmatpush1.bf16.msra.mxu1 %v5442_v38  ;;  %v5526_v37 = vld [vmem:[#allocation5 + $0x468] ss:$16 sps:$4 sm:$0xff]   ;;  %v5531_v38 = vld [vmem:[#allocation5 + $0x484] ss:$16 sps:$4 sm:$0xff]  }
  0xd5   :  { %2759 = vmatprep.subr.bf16.mxu0 %v5447_v39  ;;  %3046 = vmatprep.subr.bf16.mxu1 %v5450_v40  ;;  %v5534_v39 = vld [vmem:[#allocation5 + $0x48c] ss:$16 sps:$4 sm:$0xff]   ;;  %v5529_v40 = vld [vmem:[#allocation5 + $0x480] ss:$16 sps:$4 sm:$0xff]  }
  0xd8   :  { %2760 = vmatpush1.bf16.msra.mxu0 %v5445_v41  ;;  %3047 = vmatpush1.bf16.msra.mxu1 %v5448_v42  ;;  %v5532_v41 = vld [vmem:[#allocation5 + $0x488] ss:$16 sps:$4 sm:$0xff]   ;;  %v5537_v42 = vld [vmem:[#allocation5 + $0x4a4] ss:$16 sps:$4 sm:$0xff]  }
  0xd9   :  { %2761 = vmatprep.subr.bf16.mxu0 %v5453_v44  ;;  %3048 = vmatprep.subr.bf16.mxu1 %v5456_v45  ;;  %v5540_v44 = vld [vmem:[#allocation5 + $0x4ac] ss:$16 sps:$4 sm:$0xff]   ;;  %v5535_v45 = vld [vmem:[#allocation5 + $0x4a0] ss:$16 sps:$4 sm:$0xff]  }
  0xdc   :  { %2762 = vmatpush1.bf16.msra.mxu0 %v5451_v46  ;;  %3049 = vmatpush1.bf16.msra.mxu1 %v5454_v47  ;;  %v5538_v46 = vld [vmem:[#allocation5 + $0x4a8] ss:$16 sps:$4 sm:$0xff]   ;;  %v5543_v47 = vld [vmem:[#allocation5 + $0x4c4] ss:$16 sps:$4 sm:$0xff]  }
  0xdd   :  { %2763 = vmatprep.subr.bf16.mxu0 %v5459_v48  ;;  %3050 = vmatprep.subr.bf16.mxu1 %v5462_v50  ;;  %v5546_v48 = vld [vmem:[#allocation5 + $0x4cc] ss:$16 sps:$4 sm:$0xff]   ;;  %v5541_v50 = vld [vmem:[#allocation5 + $0x4c0] ss:$16 sps:$4 sm:$0xff]  }
  0xe0   :  { %2764 = vmatpush1.bf16.msra.mxu0 %v5457_v51  ;;  %3051 = vmatpush1.bf16.msra.mxu1 %v5460_v52  ;;  %v5544_v51 = vld [vmem:[#allocation5 + $0x4c8] ss:$16 sps:$4 sm:$0xff]   ;;  %v5549_v52 = vld [vmem:[#allocation5 + $0x4e4] ss:$16 sps:$4 sm:$0xff]  }
  0xe1   :  { %2765 = vmatprep.subr.bf16.mxu0 %v5465_v53  ;;  %3052 = vmatprep.subr.bf16.mxu1 %v5468_v54  ;;  %v5552_v53 = vld [vmem:[#allocation5 + $0x4ec] ss:$16 sps:$4 sm:$0xff]   ;;  %v5547_v54 = vld [vmem:[#allocation5 + $0x4e0] ss:$16 sps:$4 sm:$0xff]  }
  0xe4   :  { %2766 = vmatpush1.bf16.msra.mxu0 %v5463_v55  ;;  %3053 = vmatpush1.bf16.msra.mxu1 %v5466_v56  ;;  %v5550_v55 = vld [vmem:[#allocation5 + $0x4e8] ss:$16 sps:$4 sm:$0xff]   ;;  %v5555_v56 = vld [vmem:[#allocation5 + $0x504] ss:$16 sps:$4 sm:$0xff]  }
  0xe5   :  { %2767 = vmatprep.subr.bf16.mxu0 %v5471_v57  ;;  %3054 = vmatprep.subr.bf16.mxu1 %v5474_v58  ;;  %v5558_v57 = vld [vmem:[#allocation5 + $0x50c] ss:$16 sps:$4 sm:$0xff]   ;;  %v5553_v58 = vld [vmem:[#allocation5 + $0x500] ss:$16 sps:$4 sm:$0xff]  }
  0xe8   :  { %2768 = vmatpush1.bf16.msra.mxu0 %v5469_v59  ;;  %3055 = vmatpush1.bf16.msra.mxu1 %v5472_v60  ;;  %v5556_v59 = vld [vmem:[#allocation5 + $0x508] ss:$16 sps:$4 sm:$0xff]   ;;  %v5561_v60 = vld [vmem:[#allocation5 + $0x524] ss:$16 sps:$4 sm:$0xff]  }
  0xe9   :  { %2769 = vmatprep.subr.bf16.mxu0 %v5477_v61  ;;  %3056 = vmatprep.subr.bf16.mxu1 %v5480_v62  ;;  %v5564_v61 = vld [vmem:[#allocation5 + $0x52c] ss:$16 sps:$4 sm:$0xff]   ;;  %v5559_v62 = vld [vmem:[#allocation5 + $0x520] ss:$16 sps:$4 sm:$0xff]  }
  0xec   :  { %2770 = vmatpush1.bf16.msra.mxu0 %v5475_v63  ;;  %3057 = vmatpush1.bf16.msra.mxu1 %v5478_v0  ;;  %v5562_v63 = vld [vmem:[#allocation5 + $0x528] ss:$16 sps:$4 sm:$0xff]   ;;  %v5567_v0 = vld [vmem:[#allocation5 + $0x544] ss:$16 sps:$4 sm:$0xff]  }
  0xed   :  { %2771 = vmatprep.subr.bf16.mxu0 %v5483_v1  ;;  %3058 = vmatprep.subr.bf16.mxu1 %v5486_v2  ;;  %v5570_v1 = vld [vmem:[#allocation5 + $0x54c] ss:$16 sps:$4 sm:$0xff]   ;;  %v5565_v2 = vld [vmem:[#allocation5 + $0x540] ss:$16 sps:$4 sm:$0xff]  }
  0xf0   :  { %2772 = vmatpush1.bf16.msra.mxu0 %v5481_v3  ;;  %3059 = vmatpush1.bf16.msra.mxu1 %v5484_v4  ;;  %v5568_v3 = vld [vmem:[#allocation5 + $0x548] ss:$16 sps:$4 sm:$0xff]   ;;  %v5573_v4 = vld [vmem:[#allocation5 + $0x564] ss:$16 sps:$4 sm:$0xff]  }
  0xf1   :  { %2773 = vmatprep.subr.bf16.mxu0 %v5489_v5  ;;  %3060 = vmatprep.subr.bf16.mxu1 %v5492_v6  ;;  %v5576_v5 = vld [vmem:[#allocation5 + $0x56c] ss:$16 sps:$4 sm:$0xff]   ;;  %v5571_v6 = vld [vmem:[#allocation5 + $0x560] ss:$16 sps:$4 sm:$0xff]  }
  0xf4   :  { %2774 = vmatpush1.bf16.msra.mxu0 %v5487_v7  ;;  %3061 = vmatpush1.bf16.msra.mxu1 %v5490_v8  ;;  %v5574_v7 = vld [vmem:[#allocation5 + $0x568] ss:$16 sps:$4 sm:$0xff]   ;;  %v5579_v8 = vld [vmem:[#allocation5 + $0x584] ss:$16 sps:$4 sm:$0xff]  }
  0xf5   :  { %2775 = vmatprep.subr.bf16.mxu0 %v5495_v10  ;;  %3062 = vmatprep.subr.bf16.mxu1 %v5498_v11  ;;  %v5582_v10 = vld [vmem:[#allocation5 + $0x58c] ss:$16 sps:$4 sm:$0xff]   ;;  %v5577_v11 = vld [vmem:[#allocation5 + $0x580] ss:$16 sps:$4 sm:$0xff]  }
  0xf8   :  { %2776 = vmatpush1.bf16.msra.mxu0 %v5493_v12  ;;  %3063 = vmatpush1.bf16.msra.mxu1 %v5496_v13  ;;  %v5580_v12 = vld [vmem:[#allocation5 + $0x588] ss:$16 sps:$4 sm:$0xff]   ;;  %v5585_v13 = vld [vmem:[#allocation5 + $0x5a4] ss:$16 sps:$4 sm:$0xff]  }
  0xf9   :  { %2777 = vmatprep.subr.bf16.mxu0 %v5501_v14  ;;  %3064 = vmatprep.subr.bf16.mxu1 %v5504_v15  ;;  %v5588_v14 = vld [vmem:[#allocation5 + $0x5ac] ss:$16 sps:$4 sm:$0xff]   ;;  %v5583_v15 = vld [vmem:[#allocation5 + $0x5a0] ss:$16 sps:$4 sm:$0xff]  }
  0xfc   :  { %2778 = vmatpush1.bf16.msra.mxu0 %v5499_v16  ;;  %3065 = vmatpush1.bf16.msra.mxu1 %v5502_v17  ;;  %v5586_v16 = vld [vmem:[#allocation5 + $0x5a8] ss:$16 sps:$4 sm:$0xff]   ;;  %v5591_v17 = vld [vmem:[#allocation5 + $0x5c4] ss:$16 sps:$4 sm:$0xff]  }
  0xfd   :  { %2788 = vmatprep.subr.bf16.mxu0 %v5507_v18  ;;  %3075 = vmatprep.subr.bf16.mxu1 %v5510_v19  ;;  %v5594_v18 = vld [vmem:[#allocation5 + $0x5cc] ss:$16 sps:$4 sm:$0xff]   ;;  %v140_v19 = vcombine.high %v6492_v23, %v6492_v23 }
  0xff   :  { %2780 = vmatmul.mubr.bf16.vlgmr.msra.gmra.mrb[0].mxu0 %v196_v21  ;;  %3067 = vmatmul.mubr.bf16.vlgmr.msra.gmra.mrb[0].mxu1 %v196_v21  ;;  %v5592_v21 = vld [vmem:[#allocation5 + $0x5c8] ss:$16 sps:$4 sm:$0xff]  }
 0x100   :  { %2789 = vmatpush1.bf16.msra.mxu0 %v5505_v20  ;;  %3076 = vmatpush1.bf16.msra.mxu1 %v5508_v22  ;;  %v5589_v20 = vld [vmem:[#allocation5 + $0x5c0] ss:$16 sps:$4 sm:$0xff]   ;;  %v5597_v22 = vld [vmem:[#allocation5 + $0x5e4] ss:$16 sps:$4 sm:$0xff]  }
 0x101   :  { %2790 = vmatprep.subr.bf16.mxu0 %v5513_v24  ;;  %3077 = vmatprep.subr.bf16.mxu1 %v5516_v25  ;;  %v5600_v24 = vld [vmem:[#allocation5 + $0x5ec] ss:$16 sps:$4 sm:$0xff]   ;;  %v6503_v25 = vrot.slane %v140_v19, %v6482_v49  ;;  %v5676_v19 = vld [vmem:[#allocation5 + $0x788] ss:$16 sps:$4 sm:$0xff]  }
 0x102   :  { %2820 = vmatprep.mubr.bf16.mxu0 %v199_v31  ;;  %3107 = vmatprep.mubr.bf16.mxu1 %v199_v31  ;;  %v5601_v31 = vld [vmem:[#allocation5 + $0x600] ss:$16 sps:$4 sm:$0xff]  }
 0x103   :  { %v156_v23 = vcombine.high %v6503_v25, %v6503_v25 }
 0x104   :  { %2791 = vmatpush1.bf16.msra.mxu0 %v5511_v9  ;;  %3078 = vmatpush1.bf16.msra.mxu1 %v5514_v28  ;;  %v5598_v9 = vld [vmem:[#allocation5 + $0x5e8] ss:$16 sps:$4 sm:$0xff]   ;;  %v5603_v28 = vld [vmem:[#allocation5 + $0x604] ss:$16 sps:$4 sm:$0xff]  }
 0x105   :  { %2792 = vmatprep.subr.bf16.mxu0 %v5519_v29  ;;  %3079 = vmatprep.subr.bf16.mxu1 %v5522_v30  ;;  %v5606_v29 = vld [vmem:[#allocation5 + $0x60c] ss:$16 sps:$4 sm:$0xff]   ;;  %v198_v30 = vpack.c.bf16 %v6496_v26, %v6496_v26  ;;  %v5613_v26 = vld [vmem:[#allocation5 + $0x640] ss:$16 sps:$4 sm:$0xff]  }
 0x108   :  { %2793 = vmatpush1.bf16.msra.mxu0 %v5517_v32  ;;  %3080 = vmatpush1.bf16.msra.mxu1 %v5520_v33  ;;  %v5604_v32 = vld [vmem:[#allocation5 + $0x608] ss:$16 sps:$4 sm:$0xff]   ;;  %v5609_v33 = vld [vmem:[#allocation5 + $0x624] ss:$16 sps:$4 sm:$0xff]  }
 0x109   :  { %2794 = vmatprep.subr.bf16.mxu0 %v5525_v34  ;;  %3081 = vmatprep.subr.bf16.mxu1 %v5528_v35  ;;  %v5612_v34 = vld [vmem:[#allocation5 + $0x62c] ss:$16 sps:$4 sm:$0xff]   ;;  %v201_v35 = vpack.c.bf16 %v156_v23, %v156_v23  ;;  %v5688_v23 = vld [vmem:[#allocation5 + $0x7c8] ss:$16 sps:$4 sm:$0xff]  }
 0x10c   :  { %2795 = vmatpush1.bf16.msra.mxu0 %v5523_v36  ;;  %3082 = vmatpush1.bf16.msra.mxu1 %v5526_v37  ;;  %v5607_v36 = vld [vmem:[#allocation5 + $0x620] ss:$16 sps:$4 sm:$0xff]   ;;  %v5610_v37 = vld [vmem:[#allocation5 + $0x628] ss:$16 sps:$4 sm:$0xff]  }
 0x10d   :  { %2796 = vmatprep.subr.bf16.mxu0 %v5531_v38  ;;  %3083 = vmatprep.subr.bf16.mxu1 %v5534_v39  ;;  %v5615_v38 = vld [vmem:[#allocation5 + $0x644] ss:$16 sps:$4 sm:$0xff]   ;;  %v5618_v39 = vld [vmem:[#allocation5 + $0x64c] ss:$16 sps:$4 sm:$0xff]  }
 0x110   :  { %2797 = vmatpush1.bf16.msra.mxu0 %v5529_v40  ;;  %3084 = vmatpush1.bf16.msra.mxu1 %v5532_v41  ;;  %v5616_v40 = vld [vmem:[#allocation5 + $0x648] ss:$16 sps:$4 sm:$0xff]   ;;  %v5621_v41 = vld [vmem:[#allocation5 + $0x664] ss:$16 sps:$4 sm:$0xff]  }
 0x111   :  { %2798 = vmatprep.subr.bf16.mxu0 %v5537_v42  ;;  %3085 = vmatprep.subr.bf16.mxu1 %v5540_v44  ;;  %v5624_v42 = vld [vmem:[#allocation5 + $0x66c] ss:$16 sps:$4 sm:$0xff]   ;;  %v5619_v44 = vld [vmem:[#allocation5 + $0x660] ss:$16 sps:$4 sm:$0xff]  }
 0x114   :  { %2799 = vmatpush1.bf16.msra.mxu0 %v5535_v45  ;;  %3086 = vmatpush1.bf16.msra.mxu1 %v5538_v46  ;;  %v5622_v45 = vld [vmem:[#allocation5 + $0x668] ss:$16 sps:$4 sm:$0xff]   ;;  %v5627_v46 = vld [vmem:[#allocation5 + $0x684] ss:$16 sps:$4 sm:$0xff]  }
 0x115   :  { %2800 = vmatprep.subr.bf16.mxu0 %v5543_v47  ;;  %3087 = vmatprep.subr.bf16.mxu1 %v5546_v48  ;;  %v5630_v47 = vld [vmem:[#allocation5 + $0x68c] ss:$16 sps:$4 sm:$0xff]   ;;  %v5625_v48 = vld [vmem:[#allocation5 + $0x680] ss:$16 sps:$4 sm:$0xff]  }
 0x118   :  { %2801 = vmatpush1.bf16.msra.mxu0 %v5541_v50  ;;  %3088 = vmatpush1.bf16.msra.mxu1 %v5544_v51  ;;  %v5628_v50 = vld [vmem:[#allocation5 + $0x688] ss:$16 sps:$4 sm:$0xff]   ;;  %v5633_v51 = vld [vmem:[#allocation5 + $0x6a4] ss:$16 sps:$4 sm:$0xff]  }
 0x119   :  { %2802 = vmatprep.subr.bf16.mxu0 %v5549_v52  ;;  %3089 = vmatprep.subr.bf16.mxu1 %v5552_v53  ;;  %v5636_v52 = vld [vmem:[#allocation5 + $0x6ac] ss:$16 sps:$4 sm:$0xff]   ;;  %v5631_v53 = vld [vmem:[#allocation5 + $0x6a0] ss:$16 sps:$4 sm:$0xff]  }
 0x11c   :  { %2803 = vmatpush1.bf16.msra.mxu0 %v5547_v54  ;;  %3090 = vmatpush1.bf16.msra.mxu1 %v5550_v55  ;;  %v5634_v54 = vld [vmem:[#allocation5 + $0x6a8] ss:$16 sps:$4 sm:$0xff]   ;;  %v5639_v55 = vld [vmem:[#allocation5 + $0x6c4] ss:$16 sps:$4 sm:$0xff]  }
 0x11d   :  { %2804 = vmatprep.subr.bf16.mxu0 %v5555_v56  ;;  %3091 = vmatprep.subr.bf16.mxu1 %v5558_v57  ;;  %v5642_v56 = vld [vmem:[#allocation5 + $0x6cc] ss:$16 sps:$4 sm:$0xff]   ;;  %v5637_v57 = vld [vmem:[#allocation5 + $0x6c0] ss:$16 sps:$4 sm:$0xff]  }
 0x120   :  { %2805 = vmatpush1.bf16.msra.mxu0 %v5553_v58  ;;  %3092 = vmatpush1.bf16.msra.mxu1 %v5556_v59  ;;  %v5640_v58 = vld [vmem:[#allocation5 + $0x6c8] ss:$16 sps:$4 sm:$0xff]   ;;  %v5645_v59 = vld [vmem:[#allocation5 + $0x6e4] ss:$16 sps:$4 sm:$0xff]  }
 0x121   :  { %2806 = vmatprep.subr.bf16.mxu0 %v5561_v60  ;;  %3093 = vmatprep.subr.bf16.mxu1 %v5564_v61  ;;  %v5648_v60 = vld [vmem:[#allocation5 + $0x6ec] ss:$16 sps:$4 sm:$0xff]   ;;  %v5643_v61 = vld [vmem:[#allocation5 + $0x6e0] ss:$16 sps:$4 sm:$0xff]  }
 0x124   :  { %2807 = vmatpush1.bf16.msra.mxu0 %v5559_v62  ;;  %3094 = vmatpush1.bf16.msra.mxu1 %v5562_v63  ;;  %v5646_v62 = vld [vmem:[#allocation5 + $0x6e8] ss:$16 sps:$4 sm:$0xff]   ;;  %v5651_v63 = vld [vmem:[#allocation5 + $0x704] ss:$16 sps:$4 sm:$0xff]  }
 0x125   :  { %2808 = vmatprep.subr.bf16.mxu0 %v5567_v0  ;;  %3095 = vmatprep.subr.bf16.mxu1 %v5570_v1  ;;  %v5654_v0 = vld [vmem:[#allocation5 + $0x70c] ss:$16 sps:$4 sm:$0xff]   ;;  %v5649_v1 = vld [vmem:[#allocation5 + $0x700] ss:$16 sps:$4 sm:$0xff]  }
 0x128   :  { %2809 = vmatpush1.bf16.msra.mxu0 %v5565_v2  ;;  %3096 = vmatpush1.bf16.msra.mxu1 %v5568_v3  ;;  %v5652_v2 = vld [vmem:[#allocation5 + $0x708] ss:$16 sps:$4 sm:$0xff]   ;;  %v5657_v3 = vld [vmem:[#allocation5 + $0x724] ss:$16 sps:$4 sm:$0xff]  }
 0x129   :  { %2810 = vmatprep.subr.bf16.mxu0 %v5573_v4  ;;  %3097 = vmatprep.subr.bf16.mxu1 %v5576_v5  ;;  %v5660_v4 = vld [vmem:[#allocation5 + $0x72c] ss:$16 sps:$4 sm:$0xff]   ;;  %v5655_v5 = vld [vmem:[#allocation5 + $0x720] ss:$16 sps:$4 sm:$0xff]  }
 0x12c   :  { %2811 = vmatpush1.bf16.msra.mxu0 %v5571_v6  ;;  %3098 = vmatpush1.bf16.msra.mxu1 %v5574_v7  ;;  %v5658_v6 = vld [vmem:[#allocation5 + $0x728] ss:$16 sps:$4 sm:$0xff]   ;;  %v5663_v7 = vld [vmem:[#allocation5 + $0x744] ss:$16 sps:$4 sm:$0xff]  }
 0x12d   :  { %2812 = vmatprep.subr.bf16.mxu0 %v5579_v8  ;;  %3099 = vmatprep.subr.bf16.mxu1 %v5582_v10  ;;  %v5666_v8 = vld [vmem:[#allocation5 + $0x74c] ss:$16 sps:$4 sm:$0xff]   ;;  %v5661_v10 = vld [vmem:[#allocation5 + $0x740] ss:$16 sps:$4 sm:$0xff]  }
 0x130   :  { %2813 = vmatpush1.bf16.msra.mxu0 %v5577_v11  ;;  %3100 = vmatpush1.bf16.msra.mxu1 %v5580_v12  ;;  %v5664_v11 = vld [vmem:[#allocation5 + $0x748] ss:$16 sps:$4 sm:$0xff]   ;;  %v5669_v12 = vld [vmem:[#allocation5 + $0x764] ss:$16 sps:$4 sm:$0xff]  }
 0x131   :  { %2814 = vmatprep.subr.bf16.mxu0 %v5585_v13  ;;  %3101 = vmatprep.subr.bf16.mxu1 %v5588_v14  ;;  %v5672_v13 = vld [vmem:[#allocation5 + $0x76c] ss:$16 sps:$4 sm:$0xff]   ;;  %v5667_v14 = vld [vmem:[#allocation5 + $0x760] ss:$16 sps:$4 sm:$0xff]  }
 0x134   :  { %2815 = vmatpush1.bf16.msra.mxu0 %v5583_v15  ;;  %3102 = vmatpush1.bf16.msra.mxu1 %v5586_v16  ;;  %v5670_v15 = vld [vmem:[#allocation5 + $0x768] ss:$16 sps:$4 sm:$0xff]   ;;  %v5675_v16 = vld [vmem:[#allocation5 + $0x784] ss:$16 sps:$4 sm:$0xff]  }
 0x135   :  { %2816 = vmatprep.subr.bf16.mxu0 %v5591_v17  ;;  %3103 = vmatprep.subr.bf16.mxu1 %v5594_v18  ;;  %v5678_v17 = vld [vmem:[#allocation5 + $0x78c] ss:$16 sps:$4 sm:$0xff]   ;;  %v5673_v18 = vld [vmem:[#allocation5 + $0x780] ss:$16 sps:$4 sm:$0xff]  }
 0x138   :  { %2817 = vmatpush1.bf16.msra.mxu0 %v5589_v20  ;;  %3104 = vmatpush1.bf16.msra.mxu1 %v5592_v21  ;;  %v5681_v20 = vld [vmem:[#allocation5 + $0x7a4] ss:$16 sps:$4 sm:$0xff]   ;;  %v5684_v21 = vld [vmem:[#allocation5 + $0x7ac] ss:$16 sps:$4 sm:$0xff]  }
 0x139   :  { %2818 = vmatprep.subr.bf16.mxu0 %v5597_v22  ;;  %3105 = vmatprep.subr.bf16.mxu1 %v5600_v24  ;;  %v5679_v22 = vld [vmem:[#allocation5 + $0x7a0] ss:$16 sps:$4 sm:$0xff]   ;;  %v5682_v24 = vld [vmem:[#allocation5 + $0x7a8] ss:$16 sps:$4 sm:$0xff]  }
 0x13c   :  { %2819 = vmatpush1.bf16.msra.mxu0 %v5595_v27  ;;  %3106 = vmatpush1.bf16.msra.mxu1 %v5598_v9  ;;  %v5687_v27 = vld [vmem:[#allocation5 + $0x7c4] ss:$16 sps:$4 sm:$0xff]   ;;  %v5690_v9 = vld [vmem:[#allocation5 + $0x7cc] ss:$16 sps:$4 sm:$0xff]  }
 0x13d   :  { %2829 = vmatprep.subr.bf16.mxu0 %v5603_v28  ;;  %3116 = vmatprep.subr.bf16.mxu1 %v5606_v29  ;;  %v5685_v28 = vld [vmem:[#allocation5 + $0x7c0] ss:$16 sps:$4 sm:$0xff]   ;;  %v6509_v29 = vld [vmem:[#allocation2 + $0x10] sm:$0xff] }
 0x13f   :  { %2821 = vmatmul.mubr.bf16.vlgmr.msra.gmra.mrb[0].mxu0 %v198_v30  ;;  %3108 = vmatmul.mubr.bf16.vlgmr.msra.gmra.mrb[0].mxu1 %v198_v30  ;;  %v5693_v30 = vld [vmem:[#allocation5 + $0x7e4] ss:$16 sps:$4 sm:$0xff]  }
 0x140   :  { %2830 = vmatpush1.bf16.msra.mxu0 %v5601_v31  ;;  %3117 = vmatpush1.bf16.msra.mxu1 %v5604_v32  ;;  %v5696_v31 = vld [vmem:[#allocation5 + $0x7ec] ss:$16 sps:$4 sm:$0xff]   ;;  %v6513_v32 = vrot.slane %v6509_v29, %v6482_v49 }
 0x141   :  { %2831 = vmatprep.subr.bf16.mxu0 %v5609_v33  ;;  %3118 = vmatprep.subr.bf16.mxu1 %v5612_v34  ;;  %v5691_v33 = vld [vmem:[#allocation5 + $0x7e0] ss:$16 sps:$4 sm:$0xff]   ;;  %v5694_v34 = vld [vmem:[#allocation5 + $0x7e8] ss:$16 sps:$4 sm:$0xff]  }
 0x142   :  { %2861 = vmatprep.mubr.bf16.mxu0 %v201_v35  ;;  %3148 = vmatprep.mubr.bf16.mxu1 %v201_v35  ;;  %v5700_v35 = vld [vmem:[#allocation5 + $0x804] ss:$16 sps:$4 sm:$0xff]  }
 0x144   :  { %2832 = vmatpush1.bf16.msra.mxu0 %v5607_v36  ;;  %3119 = vmatpush1.bf16.msra.mxu1 %v5610_v37  ;;  %v5703_v36 = vld [vmem:[#allocation5 + $0x80c] ss:$16 sps:$4 sm:$0xff]   ;;  %v172_v37 = vcombine.high %v6513_v32, %v6513_v32 }
 0x145   :  { %2833 = vmatprep.subr.bf16.mxu0 %v5615_v38  ;;  %3120 = vmatprep.subr.bf16.mxu1 %v5618_v39  ;;  %v5698_v38 = vld [vmem:[#allocation5 + $0x800] ss:$16 sps:$4 sm:$0xff]   ;;  %v200_v39 = vpack.c.bf16 %v6503_v25, %v6503_v25 }
 0x146   :  { %v5710_v25 = vld [vmem:[#allocation5 + $0x840] ss:$16 sps:$4 sm:$0xff]  }
 0x148   :  { %2834 = vmatpush1.bf16.msra.mxu0 %v5613_v26  ;;  %3121 = vmatpush1.bf16.msra.mxu1 %v5616_v40  ;;  %v5701_v26 = vld [vmem:[#allocation5 + $0x808] ss:$16 sps:$4 sm:$0xff]   ;;  %v5706_v40 = vld [vmem:[#allocation5 + $0x824] ss:$16 sps:$4 sm:$0xff]  }
 0x149   :  { %2835 = vmatprep.subr.bf16.mxu0 %v5621_v41  ;;  %3122 = vmatprep.subr.bf16.mxu1 %v5624_v42  ;;  %v5709_v41 = vld [vmem:[#allocation5 + $0x82c] ss:$16 sps:$4 sm:$0xff]   ;;  %v203_v42 = vpack.c.bf16 %v172_v37, %v172_v37  ;;  %v5782_v37 = vld [vmem:[#allocation5 + $0x9c0] ss:$16 sps:$4 sm:$0xff]  }
 0x14c   :  { %2836 = vmatpush1.bf16.msra.mxu0 %v5619_v44  ;;  %3123 = vmatpush1.bf16.msra.mxu1 %v5622_v45  ;;  %v5704_v44 = vld [vmem:[#allocation5 + $0x820] ss:$16 sps:$4 sm:$0xff]   ;;  %v5707_v45 = vld [vmem:[#allocation5 + $0x828] ss:$16 sps:$4 sm:$0xff]  }
 0x14d   :  { %2837 = vmatprep.subr.bf16.mxu0 %v5627_v46  ;;  %3124 = vmatprep.subr.bf16.mxu1 %v5630_v47  ;;  %v5712_v46 = vld [vmem:[#allocation5 + $0x844] ss:$16 sps:$4 sm:$0xff]   ;;  %v5715_v47 = vld [vmem:[#allocation5 + $0x84c] ss:$16 sps:$4 sm:$0xff]  }
 0x150   :  { %2838 = vmatpush1.bf16.msra.mxu0 %v5625_v48  ;;  %3125 = vmatpush1.bf16.msra.mxu1 %v5628_v50  ;;  %v5713_v48 = vld [vmem:[#allocation5 + $0x848] ss:$16 sps:$4 sm:$0xff]   ;;  %v5718_v50 = vld [vmem:[#allocation5 + $0x864] ss:$16 sps:$4 sm:$0xff]  }
 0x151   :  { %2839 = vmatprep.subr.bf16.mxu0 %v5633_v51  ;;  %3126 = vmatprep.subr.bf16.mxu1 %v5636_v52  ;;  %v5721_v51 = vld [vmem:[#allocation5 + $0x86c] ss:$16 sps:$4 sm:$0xff]   ;;  %v5716_v52 = vld [vmem:[#allocation5 + $0x860] ss:$16 sps:$4 sm:$0xff]  }
 0x154   :  { %2840 = vmatpush1.bf16.msra.mxu0 %v5631_v53  ;;  %3127 = vmatpush1.bf16.msra.mxu1 %v5634_v54  ;;  %v5719_v53 = vld [vmem:[#allocation5 + $0x868] ss:$16 sps:$4 sm:$0xff]   ;;  %v5724_v54 = vld [vmem:[#allocation5 + $0x884] ss:$16 sps:$4 sm:$0xff]  }
 0x155   :  { %2841 = vmatprep.subr.bf16.mxu0 %v5639_v55  ;;  %3128 = vmatprep.subr.bf16.mxu1 %v5642_v56  ;;  %v5727_v55 = vld [vmem:[#allocation5 + $0x88c] ss:$16 sps:$4 sm:$0xff]   ;;  %v5722_v56 = vld [vmem:[#allocation5 + $0x880] ss:$16 sps:$4 sm:$0xff]  }
 0x158   :  { %2842 = vmatpush1.bf16.msra.mxu0 %v5637_v57  ;;  %3129 = vmatpush1.bf16.msra.mxu1 %v5640_v58  ;;  %v5725_v57 = vld [vmem:[#allocation5 + $0x888] ss:$16 sps:$4 sm:$0xff]   ;;  %v5730_v58 = vld [vmem:[#allocation5 + $0x8a4] ss:$16 sps:$4 sm:$0xff]  }
 0x159   :  { %2843 = vmatprep.subr.bf16.mxu0 %v5645_v59  ;;  %3130 = vmatprep.subr.bf16.mxu1 %v5648_v60  ;;  %v5733_v59 = vld [vmem:[#allocation5 + $0x8ac] ss:$16 sps:$4 sm:$0xff]   ;;  %v5728_v60 = vld [vmem:[#allocation5 + $0x8a0] ss:$16 sps:$4 sm:$0xff]  }
 0x15c   :  { %2844 = vmatpush1.bf16.msra.mxu0 %v5643_v61  ;;  %3131 = vmatpush1.bf16.msra.mxu1 %v5646_v62  ;;  %v5731_v61 = vld [vmem:[#allocation5 + $0x8a8] ss:$16 sps:$4 sm:$0xff]   ;;  %v5736_v62 = vld [vmem:[#allocation5 + $0x8c4] ss:$16 sps:$4 sm:$0xff]  }
 0x15d   :  { %2845 = vmatprep.subr.bf16.mxu0 %v5651_v63  ;;  %3132 = vmatprep.subr.bf16.mxu1 %v5654_v0  ;;  %v5739_v63 = vld [vmem:[#allocation5 + $0x8cc] ss:$16 sps:$4 sm:$0xff]   ;;  %v5734_v0 = vld [vmem:[#allocation5 + $0x8c0] ss:$16 sps:$4 sm:$0xff]  }
 0x160   :  { %2846 = vmatpush1.bf16.msra.mxu0 %v5649_v1  ;;  %3133 = vmatpush1.bf16.msra.mxu1 %v5652_v2  ;;  %v5737_v1 = vld [vmem:[#allocation5 + $0x8c8] ss:$16 sps:$4 sm:$0xff]   ;;  %v5742_v2 = vld [vmem:[#allocation5 + $0x8e4] ss:$16 sps:$4 sm:$0xff]  }
 0x161   :  { %2847 = vmatprep.subr.bf16.mxu0 %v5657_v3  ;;  %3134 = vmatprep.subr.bf16.mxu1 %v5660_v4  ;;  %v5745_v3 = vld [vmem:[#allocation5 + $0x8ec] ss:$16 sps:$4 sm:$0xff]   ;;  %v5740_v4 = vld [vmem:[#allocation5 + $0x8e0] ss:$16 sps:$4 sm:$0xff]  }
 0x164   :  { %2848 = vmatpush1.bf16.msra.mxu0 %v5655_v5  ;;  %3135 = vmatpush1.bf16.msra.mxu1 %v5658_v6  ;;  %v5743_v5 = vld [vmem:[#allocation5 + $0x8e8] ss:$16 sps:$4 sm:$0xff]   ;;  %v5748_v6 = vld [vmem:[#allocation5 + $0x904] ss:$16 sps:$4 sm:$0xff]  }
 0x165   :  { %2849 = vmatprep.subr.bf16.mxu0 %v5663_v7  ;;  %3136 = vmatprep.subr.bf16.mxu1 %v5666_v8  ;;  %v5751_v7 = vld [vmem:[#allocation5 + $0x90c] ss:$16 sps:$4 sm:$0xff]   ;;  %v5746_v8 = vld [vmem:[#allocation5 + $0x900] ss:$16 sps:$4 sm:$0xff]  }
 0x168   :  { %2850 = vmatpush1.bf16.msra.mxu0 %v5661_v10  ;;  %3137 = vmatpush1.bf16.msra.mxu1 %v5664_v11  ;;  %v5749_v10 = vld [vmem:[#allocation5 + $0x908] ss:$16 sps:$4 sm:$0xff]   ;;  %v5754_v11 = vld [vmem:[#allocation5 + $0x924] ss:$16 sps:$4 sm:$0xff]  }
 0x169   :  { %2851 = vmatprep.subr.bf16.mxu0 %v5669_v12  ;;  %3138 = vmatprep.subr.bf16.mxu1 %v5672_v13  ;;  %v5757_v12 = vld [vmem:[#allocation5 + $0x92c] ss:$16 sps:$4 sm:$0xff]   ;;  %v5752_v13 = vld [vmem:[#allocation5 + $0x920] ss:$16 sps:$4 sm:$0xff]  }
 0x16c   :  { %2852 = vmatpush1.bf16.msra.mxu0 %v5667_v14  ;;  %3139 = vmatpush1.bf16.msra.mxu1 %v5670_v15  ;;  %v5755_v14 = vld [vmem:[#allocation5 + $0x928] ss:$16 sps:$4 sm:$0xff]   ;;  %v5760_v15 = vld [vmem:[#allocation5 + $0x944] ss:$16 sps:$4 sm:$0xff]  }
 0x16d   :  { %2853 = vmatprep.subr.bf16.mxu0 %v5675_v16  ;;  %3140 = vmatprep.subr.bf16.mxu1 %v5678_v17  ;;  %v5763_v16 = vld [vmem:[#allocation5 + $0x94c] ss:$16 sps:$4 sm:$0xff]   ;;  %v5758_v17 = vld [vmem:[#allocation5 + $0x940] ss:$16 sps:$4 sm:$0xff]  }
 0x170   :  { %2854 = vmatpush1.bf16.msra.mxu0 %v5673_v18  ;;  %3141 = vmatpush1.bf16.msra.mxu1 %v5676_v19  ;;  %v5761_v18 = vld [vmem:[#allocation5 + $0x948] ss:$16 sps:$4 sm:$0xff]   ;;  %v5766_v19 = vld [vmem:[#allocation5 + $0x964] ss:$16 sps:$4 sm:$0xff]  }
 0x171   :  { %2855 = vmatprep.subr.bf16.mxu0 %v5681_v20  ;;  %3142 = vmatprep.subr.bf16.mxu1 %v5684_v21  ;;  %v5769_v20 = vld [vmem:[#allocation5 + $0x96c] ss:$16 sps:$4 sm:$0xff]   ;;  %v5764_v21 = vld [vmem:[#allocation5 + $0x960] ss:$16 sps:$4 sm:$0xff]  }
 0x174   :  { %2856 = vmatpush1.bf16.msra.mxu0 %v5679_v22  ;;  %3143 = vmatpush1.bf16.msra.mxu1 %v5682_v24  ;;  %v5767_v22 = vld [vmem:[#allocation5 + $0x968] ss:$16 sps:$4 sm:$0xff]   ;;  %v5772_v24 = vld [vmem:[#allocation5 + $0x984] ss:$16 sps:$4 sm:$0xff]  }
 0x175   :  { %2857 = vmatprep.subr.bf16.mxu0 %v5687_v27  ;;  %3144 = vmatprep.subr.bf16.mxu1 %v5690_v9  ;;  %v5775_v27 = vld [vmem:[#allocation5 + $0x98c] ss:$16 sps:$4 sm:$0xff]   ;;  %v5770_v9 = vld [vmem:[#allocation5 + $0x980] ss:$16 sps:$4 sm:$0xff]  }
 0x178   :  { %2858 = vmatpush1.bf16.msra.mxu0 %v5685_v28  ;;  %3145 = vmatpush1.bf16.msra.mxu1 %v5688_v23  ;;  %v5773_v28 = vld [vmem:[#allocation5 + $0x988] ss:$16 sps:$4 sm:$0xff]   ;;  %v5778_v23 = vld [vmem:[#allocation5 + $0x9a4] ss:$16 sps:$4 sm:$0xff]  }
 0x179   :  { %2859 = vmatprep.subr.bf16.mxu0 %v5693_v30  ;;  %3146 = vmatprep.subr.bf16.mxu1 %v5696_v31  ;;  %v5781_v30 = vld [vmem:[#allocation5 + $0x9ac] ss:$16 sps:$4 sm:$0xff]   ;;  %v5776_v31 = vld [vmem:[#allocation5 + $0x9a0] ss:$16 sps:$4 sm:$0xff]  }
 0x17c   :  { %2860 = vmatpush1.bf16.msra.mxu0 %v5691_v33  ;;  %3147 = vmatpush1.bf16.msra.mxu1 %v5694_v34  ;;  %v5779_v33 = vld [vmem:[#allocation5 + $0x9a8] ss:$16 sps:$4 sm:$0xff]   ;;  %v5784_v34 = vld [vmem:[#allocation5 + $0x9c4] ss:$16 sps:$4 sm:$0xff]  }
 0x17d   :  { %2870 = vmatprep.subr.bf16.mxu0 %v5700_v35  ;;  %3157 = vmatprep.subr.bf16.mxu1 %v5703_v36  ;;  %v5787_v35 = vld [vmem:[#allocation5 + $0x9cc] ss:$16 sps:$4 sm:$0xff]   ;;  %v157_v36 = vcombine.high %v6509_v29, %v6509_v29 }
 0x17f   :  { %2862 = vmatmul.mubr.bf16.vlgmr.msra.gmra.mrb[0].mxu0 %v200_v39  ;;  %3149 = vmatmul.mubr.bf16.vlgmr.msra.gmra.mrb[0].mxu1 %v200_v39  ;;  %v5790_v39 = vld [vmem:[#allocation5 + $0x9e4] ss:$16 sps:$4 sm:$0xff]  }
 0x180   :  { %2871 = vmatpush1.bf16.msra.mxu0 %v5698_v38  ;;  %3158 = vmatpush1.bf16.msra.mxu1 %v5701_v26  ;;  %v5785_v38 = vld [vmem:[#allocation5 + $0x9c8] ss:$16 sps:$4 sm:$0xff]   ;;  %v5793_v26 = vld [vmem:[#allocation5 + $0x9ec] ss:$16 sps:$4 sm:$0xff]  }
 0x181   :  { %2872 = vmatprep.subr.bf16.mxu0 %v5706_v40  ;;  %3159 = vmatprep.subr.bf16.mxu1 %v5709_v41  ;;  %v6522_v40 = vrot.slane %v157_v36, %v6482_v49  ;;  %v5788_v41 = vld [vmem:[#allocation5 + $0x9e0] ss:$16 sps:$4 sm:$0xff]   ;;  %v5802_v49 = vld [vmem:[#allocation5 + $0xa24] ss:$16 sps:$4 sm:$0xff]  }
 0x182   :  { %2902 = vmatprep.mubr.bf16.mxu0 %v203_v42  ;;  %3189 = vmatprep.mubr.bf16.mxu1 %v203_v42  ;;  %v5791_v42 = vld [vmem:[#allocation5 + $0x9e8] ss:$16 sps:$4 sm:$0xff]   ;;  %v5874_v36 = vld [vmem:[#allocation5 + $0xba4] ss:$16 sps:$4 sm:$0xff]  }
 0x183   :  { %v173_v29 = vcombine.high %v6522_v40, %v6522_v40 }
 0x184   :  { %2873 = vmatpush1.bf16.msra.mxu0 %v5704_v44  ;;  %3160 = vmatpush1.bf16.msra.mxu1 %v5707_v45  ;;  %v5796_v44 = vld [vmem:[#allocation5 + $0xa04] ss:$16 sps:$4 sm:$0xff]   ;;  %v5799_v45 = vld [vmem:[#allocation5 + $0xa0c] ss:$16 sps:$4 sm:$0xff]  }
 0x185   :  { %2874 = vmatprep.subr.bf16.mxu0 %v5712_v46  ;;  %3161 = vmatprep.subr.bf16.mxu1 %v5715_v47  ;;  %v202_v46 = vpack.c.bf16 %v6513_v32, %v6513_v32  ;;  %v5794_v47 = vld [vmem:[#allocation5 + $0xa00] ss:$16 sps:$4 sm:$0xff]  }
 0x186   :  { %v5806_v32 = vld [vmem:[#allocation5 + $0xa40] ss:$16 sps:$4 sm:$0xff]  }
 0x188   :  { %2875 = vmatpush1.bf16.msra.mxu0 %v5710_v25  ;;  %3162 = vmatpush1.bf16.msra.mxu1 %v5713_v48  ;;  %v5797_v25 = vld [vmem:[#allocation5 + $0xa08] ss:$16 sps:$4 sm:$0xff]   ;;  %v5805_v48 = vld [vmem:[#allocation5 + $0xa2c] ss:$16 sps:$4 sm:$0xff]  }
 0x189   :  { %2876 = vmatprep.subr.bf16.mxu0 %v5718_v50  ;;  %3163 = vmatprep.subr.bf16.mxu1 %v5721_v51  ;;  %v205_v50 = vpack.c.bf16 %v173_v29, %v173_v29  ;;  %v5800_v51 = vld [vmem:[#allocation5 + $0xa20] ss:$16 sps:$4 sm:$0xff]   ;;  %v5889_v29 = vld [vmem:[#allocation5 + $0xbec] ss:$16 sps:$4 sm:$0xff]  }
 0x18c   :  { %2877 = vmatpush1.bf16.msra.mxu0 %v5716_v52  ;;  %3164 = vmatpush1.bf16.msra.mxu1 %v5719_v53  ;;  %v5803_v52 = vld [vmem:[#allocation5 + $0xa28] ss:$16 sps:$4 sm:$0xff]   ;;  %v5808_v53 = vld [vmem:[#allocation5 + $0xa44] ss:$16 sps:$4 sm:$0xff]  }
 0x18d   :  { %2878 = vmatprep.subr.bf16.mxu0 %v5724_v54  ;;  %3165 = vmatprep.subr.bf16.mxu1 %v5727_v55  ;;  %v5811_v54 = vld [vmem:[#allocation5 + $0xa4c] ss:$16 sps:$4 sm:$0xff]   ;;  %v5809_v55 = vld [vmem:[#allocation5 + $0xa48] ss:$16 sps:$4 sm:$0xff]  }
 0x190   :  { %2879 = vmatpush1.bf16.msra.mxu0 %v5722_v56  ;;  %3166 = vmatpush1.bf16.msra.mxu1 %v5725_v57  ;;  %v5814_v56 = vld [vmem:[#allocation5 + $0xa64] ss:$16 sps:$4 sm:$0xff]   ;;  %v5817_v57 = vld [vmem:[#allocation5 + $0xa6c] ss:$16 sps:$4 sm:$0xff]  }
 0x191   :  { %2880 = vmatprep.subr.bf16.mxu0 %v5730_v58  ;;  %3167 = vmatprep.subr.bf16.mxu1 %v5733_v59  ;;  %v5812_v58 = vld [vmem:[#allocation5 + $0xa60] ss:$16 sps:$4 sm:$0xff]   ;;  %v5815_v59 = vld [vmem:[#allocation5 + $0xa68] ss:$16 sps:$4 sm:$0xff]  }
 0x194   :  { %2881 = vmatpush1.bf16.msra.mxu0 %v5728_v60  ;;  %3168 = vmatpush1.bf16.msra.mxu1 %v5731_v61  ;;  %v5820_v60 = vld [vmem:[#allocation5 + $0xa84] ss:$16 sps:$4 sm:$0xff]   ;;  %v5823_v61 = vld [vmem:[#allocation5 + $0xa8c] ss:$16 sps:$4 sm:$0xff]  }
 0x195   :  { %2882 = vmatprep.subr.bf16.mxu0 %v5736_v62  ;;  %3169 = vmatprep.subr.bf16.mxu1 %v5739_v63  ;;  %v5818_v62 = vld [vmem:[#allocation5 + $0xa80] ss:$16 sps:$4 sm:$0xff]   ;;  %v5821_v63 = vld [vmem:[#allocation5 + $0xa88] ss:$16 sps:$4 sm:$0xff]  }
 0x198   :  { %2883 = vmatpush1.bf16.msra.mxu0 %v5734_v0  ;;  %3170 = vmatpush1.bf16.msra.mxu1 %v5737_v1  ;;  %v5826_v0 = vld [vmem:[#allocation5 + $0xaa4] ss:$16 sps:$4 sm:$0xff]   ;;  %v5829_v1 = vld [vmem:[#allocation5 + $0xaac] ss:$16 sps:$4 sm:$0xff]  }
 0x199   :  { %2884 = vmatprep.subr.bf16.mxu0 %v5742_v2  ;;  %3171 = vmatprep.subr.bf16.mxu1 %v5745_v3  ;;  %v5824_v2 = vld [vmem:[#allocation5 + $0xaa0] ss:$16 sps:$4 sm:$0xff]   ;;  %v5827_v3 = vld [vmem:[#allocation5 + $0xaa8] ss:$16 sps:$4 sm:$0xff]  }
 0x19c   :  { %2885 = vmatpush1.bf16.msra.mxu0 %v5740_v4  ;;  %3172 = vmatpush1.bf16.msra.mxu1 %v5743_v5  ;;  %v5832_v4 = vld [vmem:[#allocation5 + $0xac4] ss:$16 sps:$4 sm:$0xff]   ;;  %v5835_v5 = vld [vmem:[#allocation5 + $0xacc] ss:$16 sps:$4 sm:$0xff]  }
 0x19d   :  { %2886 = vmatprep.subr.bf16.mxu0 %v5748_v6  ;;  %3173 = vmatprep.subr.bf16.mxu1 %v5751_v7  ;;  %v5830_v6 = vld [vmem:[#allocation5 + $0xac0] ss:$16 sps:$4 sm:$0xff]   ;;  %v5833_v7 = vld [vmem:[#allocation5 + $0xac8] ss:$16 sps:$4 sm:$0xff]  }
 0x1a0   :  { %2887 = vmatpush1.bf16.msra.mxu0 %v5746_v8  ;;  %3174 = vmatpush1.bf16.msra.mxu1 %v5749_v10  ;;  %v5838_v8 = vld [vmem:[#allocation5 + $0xae4] ss:$16 sps:$4 sm:$0xff]   ;;  %v5841_v10 = vld [vmem:[#allocation5 + $0xaec] ss:$16 sps:$4 sm:$0xff]  }
 0x1a1   :  { %2888 = vmatprep.subr.bf16.mxu0 %v5754_v11  ;;  %3175 = vmatprep.subr.bf16.mxu1 %v5757_v12  ;;  %v5836_v11 = vld [vmem:[#allocation5 + $0xae0] ss:$16 sps:$4 sm:$0xff]   ;;  %v5839_v12 = vld [vmem:[#allocation5 + $0xae8] ss:$16 sps:$4 sm:$0xff]  }
 0x1a4   :  { %2889 = vmatpush1.bf16.msra.mxu0 %v5752_v13  ;;  %3176 = vmatpush1.bf16.msra.mxu1 %v5755_v14  ;;  %v5844_v13 = vld [vmem:[#allocation5 + $0xb04] ss:$16 sps:$4 sm:$0xff]   ;;  %v5847_v14 = vld [vmem:[#allocation5 + $0xb0c] ss:$16 sps:$4 sm:$0xff]  }
 0x1a5   :  { %2890 = vmatprep.subr.bf16.mxu0 %v5760_v15  ;;  %3177 = vmatprep.subr.bf16.mxu1 %v5763_v16  ;;  %v5842_v15 = vld [vmem:[#allocation5 + $0xb00] ss:$16 sps:$4 sm:$0xff]   ;;  %v5845_v16 = vld [vmem:[#allocation5 + $0xb08] ss:$16 sps:$4 sm:$0xff]  }
 0x1a8   :  { %2891 = vmatpush1.bf16.msra.mxu0 %v5758_v17  ;;  %3178 = vmatpush1.bf16.msra.mxu1 %v5761_v18  ;;  %v5850_v17 = vld [vmem:[#allocation5 + $0xb24] ss:$16 sps:$4 sm:$0xff]   ;;  %v5853_v18 = vld [vmem:[#allocation5 + $0xb2c] ss:$16 sps:$4 sm:$0xff]  }
 0x1a9   :  { %2892 = vmatprep.subr.bf16.mxu0 %v5766_v19  ;;  %3179 = vmatprep.subr.bf16.mxu1 %v5769_v20  ;;  %v5848_v19 = vld [vmem:[#allocation5 + $0xb20] ss:$16 sps:$4 sm:$0xff]   ;;  %v5851_v20 = vld [vmem:[#allocation5 + $0xb28] ss:$16 sps:$4 sm:$0xff]  }
 0x1ac   :  { %2893 = vmatpush1.bf16.msra.mxu0 %v5764_v21  ;;  %3180 = vmatpush1.bf16.msra.mxu1 %v5767_v22  ;;  %v5856_v21 = vld [vmem:[#allocation5 + $0xb44] ss:$16 sps:$4 sm:$0xff]   ;;  %v5859_v22 = vld [vmem:[#allocation5 + $0xb4c] ss:$16 sps:$4 sm:$0xff]  }
 0x1ad   :  { %2894 = vmatprep.subr.bf16.mxu0 %v5772_v24  ;;  %3181 = vmatprep.subr.bf16.mxu1 %v5775_v27  ;;  %v5854_v24 = vld [vmem:[#allocation5 + $0xb40] ss:$16 sps:$4 sm:$0xff]   ;;  %v5857_v27 = vld [vmem:[#allocation5 + $0xb48] ss:$16 sps:$4 sm:$0xff]  }
 0x1b0   :  { %2895 = vmatpush1.bf16.msra.mxu0 %v5770_v9  ;;  %3182 = vmatpush1.bf16.msra.mxu1 %v5773_v28  ;;  %v5862_v9 = vld [vmem:[#allocation5 + $0xb64] ss:$16 sps:$4 sm:$0xff]   ;;  %v5865_v28 = vld [vmem:[#allocation5 + $0xb6c] ss:$16 sps:$4 sm:$0xff]  }
 0x1b1   :  { %2896 = vmatprep.subr.bf16.mxu0 %v5778_v23  ;;  %3183 = vmatprep.subr.bf16.mxu1 %v5781_v30  ;;  %v5860_v23 = vld [vmem:[#allocation5 + $0xb60] ss:$16 sps:$4 sm:$0xff]   ;;  %v5863_v30 = vld [vmem:[#allocation5 + $0xb68] ss:$16 sps:$4 sm:$0xff]  }
 0x1b4   :  { %2897 = vmatpush1.bf16.msra.mxu0 %v5776_v31  ;;  %3184 = vmatpush1.bf16.msra.mxu1 %v5779_v33  ;;  %v5868_v31 = vld [vmem:[#allocation5 + $0xb84] ss:$16 sps:$4 sm:$0xff]   ;;  %v5871_v33 = vld [vmem:[#allocation5 + $0xb8c] ss:$16 sps:$4 sm:$0xff]  }
 0x1b5   :  { %2898 = vmatprep.subr.bf16.mxu0 %v5784_v34  ;;  %3185 = vmatprep.subr.bf16.mxu1 %v5787_v35  ;;  %v5866_v34 = vld [vmem:[#allocation5 + $0xb80] ss:$16 sps:$4 sm:$0xff]   ;;  %v5869_v35 = vld [vmem:[#allocation5 + $0xb88] ss:$16 sps:$4 sm:$0xff]  }
 0x1b8   :  { %2899 = vmatpush1.bf16.msra.mxu0 %v5782_v37  ;;  %3186 = vmatpush1.bf16.msra.mxu1 %v5785_v38  ;;  %v5877_v37 = vld [vmem:[#allocation5 + $0xbac] ss:$16 sps:$4 sm:$0xff]   ;;  %v5872_v38 = vld [vmem:[#allocation5 + $0xba0] ss:$16 sps:$4 sm:$0xff]  }
 0x1b9   :  { %2900 = vmatprep.subr.bf16.mxu0 %v5790_v39  ;;  %3187 = vmatprep.subr.bf16.mxu1 %v5793_v26  ;;  %v5875_v39 = vld [vmem:[#allocation5 + $0xba8] ss:$16 sps:$4 sm:$0xff]   ;;  %v5880_v26 = vld [vmem:[#allocation5 + $0xbc4] ss:$16 sps:$4 sm:$0xff]  }
 0x1bc   :  { %2901 = vmatpush1.bf16.msra.mxu0 %v5788_v41  ;;  %3188 = vmatpush1.bf16.msra.mxu1 %v5791_v42  ;;  %v5883_v41 = vld [vmem:[#allocation5 + $0xbcc] ss:$16 sps:$4 sm:$0xff]   ;;  %v5878_v42 = vld [vmem:[#allocation5 + $0xbc0] ss:$16 sps:$4 sm:$0xff]  }
 0x1bd   :  { %2911 = vmatprep.subr.bf16.mxu0 %v5796_v44  ;;  %3198 = vmatprep.subr.bf16.mxu1 %v5799_v45  ;;  %v5881_v44 = vld [vmem:[#allocation5 + $0xbc8] ss:$16 sps:$4 sm:$0xff]   ;;  %v5886_v45 = vld [vmem:[#allocation5 + $0xbe4] ss:$16 sps:$4 sm:$0xff]  }
 0x1bf   :  { %2903 = vmatmul.mubr.bf16.vlgmr.msra.gmra.mrb[0].mxu0 %v202_v46  ;;  %3190 = vmatmul.mubr.bf16.vlgmr.msra.gmra.mrb[0].mxu1 %v202_v46  ;;  %v5884_v46 = vld [vmem:[#allocation5 + $0xbe0] ss:$16 sps:$4 sm:$0xff]  }
 0x1c0   :  { %2912 = vmatpush1.bf16.msra.mxu0 %v5794_v47  ;;  %3199 = vmatpush1.bf16.msra.mxu1 %v5797_v25  ;;  %v5887_v47 = vld [vmem:[#allocation5 + $0xbe8] ss:$16 sps:$4 sm:$0xff]   ;;  %v5893_v25 = vld [vmem:[#allocation5 + $0xc04] ss:$16 sps:$4 sm:$0xff]  }
 0x1c1   :  { %2913 = vmatprep.subr.bf16.mxu0 %v5802_v49  ;;  %3200 = vmatprep.subr.bf16.mxu1 %v5805_v48  ;;  %v5896_v49 = vld [vmem:[#allocation5 + $0xc0c] ss:$16 sps:$4 sm:$0xff]   ;;  %v204_v48 = vpack.c.bf16 %v6522_v40, %v6522_v40  ;;  %v5903_v40 = vld [vmem:[#allocation5 + $0xc40] ss:$16 sps:$4 sm:$0xff]  }
 0x1c2   :  { %2943 = vmatprep.mubr.bf16.mxu0 %v205_v50  ;;  %3230 = vmatprep.mubr.bf16.mxu1 %v205_v50  ;;  %v5891_v50 = vld [vmem:[#allocation5 + $0xc00] ss:$16 sps:$4 sm:$0xff]  }
 0x1c4   :  { %2914 = vmatpush1.bf16.msra.mxu0 %v5800_v51  ;;  %3201 = vmatpush1.bf16.msra.mxu1 %v5803_v52  ;;  %v5894_v51 = vld [vmem:[#allocation5 + $0xc08] ss:$16 sps:$4 sm:$0xff]   ;;  %v5899_v52 = vld [vmem:[#allocation5 + $0xc24] ss:$16 sps:$4 sm:$0xff]  }
 0x1c5   :  { %2915 = vmatprep.subr.bf16.mxu0 %v5808_v53  ;;  %3202 = vmatprep.subr.bf16.mxu1 %v5811_v54  ;;  %v5902_v53 = vld [vmem:[#allocation5 + $0xc2c] ss:$16 sps:$4 sm:$0xff]   ;;  %v5897_v54 = vld [vmem:[#allocation5 + $0xc20] ss:$16 sps:$4 sm:$0xff]  }
 0x1c8   :  { %2916 = vmatpush1.bf16.msra.mxu0 %v5806_v32  ;;  %3203 = vmatpush1.bf16.msra.mxu1 %v5809_v55  ;;  %v5900_v32 = vld [vmem:[#allocation5 + $0xc28] ss:$16 sps:$4 sm:$0xff]   ;;  %v5905_v55 = vld [vmem:[#allocation5 + $0xc44] ss:$16 sps:$4 sm:$0xff]  }
 0x1c9   :  { %2917 = vmatprep.subr.bf16.mxu0 %v5814_v56  ;;  %3204 = vmatprep.subr.bf16.mxu1 %v5817_v57  ;;  %v5908_v56 = vld [vmem:[#allocation5 + $0xc4c] ss:$16 sps:$4 sm:$0xff]   ;;  %v6353_v57 = vmov 0  }
 0x1cc   :  { %2918 = vmatpush1.bf16.msra.mxu0 %v5812_v58  ;;  %3205 = vmatpush1.bf16.msra.mxu1 %v5815_v59  ;;  %v5906_v58 = vld [vmem:[#allocation5 + $0xc48] ss:$16 sps:$4 sm:$0xff]   ;;  %v5911_v59 = vld [vmem:[#allocation5 + $0xc64] ss:$16 sps:$4 sm:$0xff]  }
 0x1cd   :  { %2919 = vmatprep.subr.bf16.mxu0 %v5820_v60  ;;  %3206 = vmatprep.subr.bf16.mxu1 %v5823_v61  ;;  %v5914_v60 = vld [vmem:[#allocation5 + $0xc6c] ss:$16 sps:$4 sm:$0xff]   ;;  %v5909_v61 = vld [vmem:[#allocation5 + $0xc60] ss:$16 sps:$4 sm:$0xff]  }
 0x1d0   :  { %2920 = vmatpush1.bf16.msra.mxu0 %v5818_v62  ;;  %3207 = vmatpush1.bf16.msra.mxu1 %v5821_v63  ;;  %v5912_v62 = vld [vmem:[#allocation5 + $0xc68] ss:$16 sps:$4 sm:$0xff]   ;;  %v5917_v63 = vld [vmem:[#allocation5 + $0xc84] ss:$16 sps:$4 sm:$0xff]  }
 0x1d1   :  { %2921 = vmatprep.subr.bf16.mxu0 %v5826_v0  ;;  %3208 = vmatprep.subr.bf16.mxu1 %v5829_v1  ;;  %v5920_v0 = vld [vmem:[#allocation5 + $0xc8c] ss:$16 sps:$4 sm:$0xff]   ;;  %v5915_v1 = vld [vmem:[#allocation5 + $0xc80] ss:$16 sps:$4 sm:$0xff]  }
 0x1d4   :  { %2922 = vmatpush1.bf16.msra.mxu0 %v5824_v2  ;;  %3209 = vmatpush1.bf16.msra.mxu1 %v5827_v3  ;;  %v5918_v2 = vld [vmem:[#allocation5 + $0xc88] ss:$16 sps:$4 sm:$0xff]   ;;  %v5923_v3 = vld [vmem:[#allocation5 + $0xca4] ss:$16 sps:$4 sm:$0xff]  }
 0x1d5   :  { %2923 = vmatprep.subr.bf16.mxu0 %v5832_v4  ;;  %3210 = vmatprep.subr.bf16.mxu1 %v5835_v5  ;;  %v5926_v4 = vld [vmem:[#allocation5 + $0xcac] ss:$16 sps:$4 sm:$0xff]   ;;  %v615_v5 = vld [vmem:[#allocation5 + $0xcc0] sm:$0xff] }
 0x1d8   :  { %2924 = vmatpush1.bf16.msra.mxu0 %v5830_v6  ;;  %3211 = vmatpush1.bf16.msra.mxu1 %v5833_v7  ;;  %v616_v6 = vld [vmem:[#allocation5 + $0xcc8] sm:$0xff]  ;;  %v5921_v7 = vld [vmem:[#allocation5 + $0xca0] ss:$16 sps:$4 sm:$0xff]  }
 0x1d9   :  { %2925 = vmatprep.subr.bf16.mxu0 %v5838_v8  ;;  %3212 = vmatprep.subr.bf16.mxu1 %v5841_v10  ;;  %v5924_v8 = vld [vmem:[#allocation5 + $0xca8] ss:$16 sps:$4 sm:$0xff]   ;;  %v5022_v10 = vcombine.high %v615_v5, %v615_v5 }
 0x1dc   :  { %2926 = vmatpush1.bf16.msra.mxu0 %v5836_v11  ;;  %3213 = vmatpush1.bf16.msra.mxu1 %v5839_v12  ;;  %v5024_v11 = vcombine.high %v616_v6, %v616_v6  ;;  %v5021_v12 = vcombine.low %v615_v5, %v615_v5  ;;  %v6006_v5 = vld [vmem:[#allocation8 + $0x188] ss:$16 sps:$4 sm:$0xff]  }
 0x1dd   :  { %2927 = vmatprep.subr.bf16.mxu0 %v5844_v13  ;;  %3214 = vmatprep.subr.bf16.mxu1 %v5847_v14  ;;  %v5023_v13 = vcombine.low %v616_v6, %v616_v6  ;;  %v4612_v14 = vld.sshfl [vmem:[#allocation2 + $0x18] sm:$0x3 pattern:$0x76325410]  ;;  %v6011_v6 = vld [vmem:[#allocation8 + $0x1a4] ss:$16 sps:$4 sm:$0xff]  }
 0x1e0   :  { %2928 = vmatpush1.bf16.msra.mxu0 %v5842_v15  ;;  %3215 = vmatpush1.bf16.msra.mxu1 %v5845_v16  ;;  %v2695_v15 = vsel %vm2693_vm0, %v5021_v12, 0  ;;  %v2701_v16 = vsel %vm2693_vm0, %v5023_v13, 0  ;;  %v6020_v12 = vld [vmem:[#allocation8 + $0x1cc] ss:$16 sps:$4 sm:$0xff]   ;;  %v6015_v13 = vld [vmem:[#allocation8 + $0x1c0] ss:$16 sps:$4 sm:$0xff]  }
 0x1e1   :  { %2929 = vmatprep.subr.bf16.mxu0 %v5850_v17  ;;  %3216 = vmatprep.subr.bf16.mxu1 %v5853_v18  ;;  %v5933_v17 = vld [vmem:[#allocation8 + $0x4] ss:$16 sps:$4 sm:$0xff]   ;;  %v5936_v18 = vld [vmem:[#allocation8 + $0xc] ss:$16 sps:$4 sm:$0xff]  }
 0x1e4   :  { %2930 = vmatpush1.bf16.msra.mxu0 %v5848_v19  ;;  %3217 = vmatpush1.bf16.msra.mxu1 %v5851_v20  ;;  %v206_v19 = vpack.c.bf16 %v4612_v14, %v4612_v14  ;;  %v5931_v20 = vld [vmem:[#allocation8] ss:$16 sps:$4 sm:$0xff]   ;;  %v6018_v14 = vld [vmem:[#allocation8 + $0x1c8] ss:$16 sps:$4 sm:$0xff]  }
 0x1e5   :  { %2931 = vmatprep.subr.bf16.mxu0 %v5856_v21  ;;  %3218 = vmatprep.subr.bf16.mxu1 %v5859_v22  ;;  %v5934_v21 = vld [vmem:[#allocation8 + $0x8] ss:$16 sps:$4 sm:$0xff]   ;;  %v5939_v22 = vld [vmem:[#allocation8 + $0x24] ss:$16 sps:$4 sm:$0xff]  }
 0x1e8   :  { %2932 = vmatpush1.bf16.msra.mxu0 %v5854_v24  ;;  %3219 = vmatpush1.bf16.msra.mxu1 %v5857_v27  ;;  %v5942_v24 = vld [vmem:[#allocation8 + $0x2c] ss:$16 sps:$4 sm:$0xff]   ;;  %v5937_v27 = vld [vmem:[#allocation8 + $0x20] ss:$16 sps:$4 sm:$0xff]  }
 0x1e9   :  { %2933 = vmatprep.subr.bf16.mxu0 %v5862_v9  ;;  %3220 = vmatprep.subr.bf16.mxu1 %v5865_v28  ;;  %v5940_v9 = vld [vmem:[#allocation8 + $0x28] ss:$16 sps:$4 sm:$0xff]   ;;  %v5945_v28 = vld [vmem:[#allocation8 + $0x44] ss:$16 sps:$4 sm:$0xff]  }
 0x1ec   :  { %2934 = vmatpush1.bf16.msra.mxu0 %v5860_v23  ;;  %3221 = vmatpush1.bf16.msra.mxu1 %v5863_v30  ;;  %v5948_v23 = vld [vmem:[#allocation8 + $0x4c] ss:$16 sps:$4 sm:$0xff]   ;;  %v5943_v30 = vld [vmem:[#allocation8 + $0x40] ss:$16 sps:$4 sm:$0xff]  }
 0x1ed   :  { %2935 = vmatprep.subr.bf16.mxu0 %v5868_v31  ;;  %3222 = vmatprep.subr.bf16.mxu1 %v5871_v33  ;;  %v5946_v31 = vld [vmem:[#allocation8 + $0x48] ss:$16 sps:$4 sm:$0xff]   ;;  %v5951_v33 = vld [vmem:[#allocation8 + $0x64] ss:$16 sps:$4 sm:$0xff]  }
 0x1f0   :  { %2936 = vmatpush1.bf16.msra.mxu0 %v5866_v34  ;;  %3223 = vmatpush1.bf16.msra.mxu1 %v5869_v35  ;;  %v5954_v34 = vld [vmem:[#allocation8 + $0x6c] ss:$16 sps:$4 sm:$0xff]   ;;  %v5949_v35 = vld [vmem:[#allocation8 + $0x60] ss:$16 sps:$4 sm:$0xff]  }
 0x1f1   :  { %2937 = vmatprep.subr.bf16.mxu0 %v5874_v36  ;;  %3224 = vmatprep.subr.bf16.mxu1 %v5877_v37  ;;  %v5952_v36 = vld [vmem:[#allocation8 + $0x68] ss:$16 sps:$4 sm:$0xff]   ;;  %v5957_v37 = vld [vmem:[#allocation8 + $0x84] ss:$16 sps:$4 sm:$0xff]  }
 0x1f4   :  { %2938 = vmatpush1.bf16.msra.mxu0 %v5872_v38  ;;  %3225 = vmatpush1.bf16.msra.mxu1 %v5875_v39  ;;  %v5960_v38 = vld [vmem:[#allocation8 + $0x8c] ss:$16 sps:$4 sm:$0xff]   ;;  %v5955_v39 = vld [vmem:[#allocation8 + $0x80] ss:$16 sps:$4 sm:$0xff]  }
 0x1f5   :  { %2939 = vmatprep.subr.bf16.mxu0 %v5880_v26  ;;  %3226 = vmatprep.subr.bf16.mxu1 %v5883_v41  ;;  %v5958_v26 = vld [vmem:[#allocation8 + $0x88] ss:$16 sps:$4 sm:$0xff]   ;;  %v5963_v41 = vld [vmem:[#allocation8 + $0xa4] ss:$16 sps:$4 sm:$0xff]  }
 0x1f8   :  { %2940 = vmatpush1.bf16.msra.mxu0 %v5878_v42  ;;  %3227 = vmatpush1.bf16.msra.mxu1 %v5881_v44  ;;  %v5966_v42 = vld [vmem:[#allocation8 + $0xac] ss:$16 sps:$4 sm:$0xff]   ;;  %v5961_v44 = vld [vmem:[#allocation8 + $0xa0] ss:$16 sps:$4 sm:$0xff]  }
 0x1f9   :  { %2941 = vmatprep.subr.bf16.mxu0 %v5886_v45  ;;  %3228 = vmatprep.subr.bf16.mxu1 %v5889_v29  ;;  %v5964_v45 = vld [vmem:[#allocation8 + $0xa8] ss:$16 sps:$4 sm:$0xff]   ;;  %v5969_v29 = vld [vmem:[#allocation8 + $0xc4] ss:$16 sps:$4 sm:$0xff]  }
 0x1fc   :  { %2942 = vmatpush1.bf16.msra.mxu0 %v5884_v46  ;;  %3229 = vmatpush1.bf16.msra.mxu1 %v5887_v47  ;;  %v5972_v46 = vld [vmem:[#allocation8 + $0xcc] ss:$16 sps:$4 sm:$0xff]   ;;  %v5967_v47 = vld [vmem:[#allocation8 + $0xc0] ss:$16 sps:$4 sm:$0xff]  }
 0x1fd   :  { %2952 = vmatprep.subr.bf16.mxu0 %v5893_v25  ;;  %3239 = vmatprep.subr.bf16.mxu1 %v5896_v49  ;;  %v5970_v25 = vld [vmem:[#allocation8 + $0xc8] ss:$16 sps:$4 sm:$0xff]   ;;  %v5975_v49 = vld [vmem:[#allocation8 + $0xe4] ss:$16 sps:$4 sm:$0xff]  }
 0x1ff   :  { %2944 = vmatmul.mubr.bf16.vlgmr.msra.gmra.mrb[0].mxu0 %v204_v48  ;;  %3231 = vmatmul.mubr.bf16.vlgmr.msra.gmra.mrb[0].mxu1 %v204_v48  ;;  %v5978_v48 = vld [vmem:[#allocation8 + $0xec] ss:$16 sps:$4 sm:$0xff]  }
 0x200   :  { %2953 = vmatpush1.bf16.msra.mxu0 %v5891_v50  ;;  %3240 = vmatpush1.bf16.msra.mxu1 %v5894_v51  ;;  %v5973_v50 = vld [vmem:[#allocation8 + $0xe0] ss:$16 sps:$4 sm:$0xff]   ;;  %v5976_v51 = vld [vmem:[#allocation8 + $0xe8] ss:$16 sps:$4 sm:$0xff]  }
 0x201   :  { %2954 = vmatprep.subr.bf16.mxu0 %v5899_v52  ;;  %3241 = vmatprep.subr.bf16.mxu1 %v5902_v53  ;;  %v5981_v52 = vld [vmem:[#allocation8 + $0x104] ss:$16 sps:$4 sm:$0xff]   ;;  %v5984_v53 = vld [vmem:[#allocation8 + $0x10c] ss:$16 sps:$4 sm:$0xff]  }
 0x202   :  { %2984 = vmatprep.mubr.bf16.mxu0 %v6353_v57  ;;  %3271 = vmatprep.mubr.bf16.mxu1 %v6353_v57  ;;  %v5985_v57 = vld [vmem:[#allocation8 + $0x120] ss:$16 sps:$4 sm:$0xff]  }
 0x204   :  { %2955 = vmatpush1.bf16.msra.mxu0 %v5897_v54  ;;  %3242 = vmatpush1.bf16.msra.mxu1 %v5900_v32  ;;  %v5979_v54 = vld [vmem:[#allocation8 + $0x100] ss:$16 sps:$4 sm:$0xff]   ;;  %v5982_v32 = vld [vmem:[#allocation8 + $0x108] ss:$16 sps:$4 sm:$0xff]  }
 0x205   :  { %2956 = vmatprep.subr.bf16.mxu0 %v5905_v55  ;;  %3243 = vmatprep.subr.bf16.mxu1 %v5908_v56  ;;  %v5987_v55 = vld [vmem:[#allocation8 + $0x124] ss:$16 sps:$4 sm:$0xff]   ;;  %v5990_v56 = vld [vmem:[#allocation8 + $0x12c] ss:$16 sps:$4 sm:$0xff]  }
 0x208   :  { %2957 = vmatpush1.bf16.msra.mxu0 %v5903_v40  ;;  %3244 = vmatpush1.bf16.msra.mxu1 %v5906_v58  ;;  %v5988_v40 = vld [vmem:[#allocation8 + $0x128] ss:$16 sps:$4 sm:$0xff]   ;;  %v5993_v58 = vld [vmem:[#allocation8 + $0x144] ss:$16 sps:$4 sm:$0xff]  }
 0x209   :  { %2958 = vmatprep.subr.bf16.mxu0 %v5911_v59  ;;  %3245 = vmatprep.subr.bf16.mxu1 %v5914_v60  ;;  %v5996_v59 = vld [vmem:[#allocation8 + $0x14c] ss:$16 sps:$4 sm:$0xff]   ;;  %v5991_v60 = vld [vmem:[#allocation8 + $0x140] ss:$16 sps:$4 sm:$0xff]  }
 0x20c   :  { %2959 = vmatpush1.bf16.msra.mxu0 %v5909_v61  ;;  %3246 = vmatpush1.bf16.msra.mxu1 %v5912_v62  ;;  %v5994_v61 = vld [vmem:[#allocation8 + $0x148] ss:$16 sps:$4 sm:$0xff]   ;;  %v5999_v62 = vld [vmem:[#allocation8 + $0x164] ss:$16 sps:$4 sm:$0xff]  }
 0x20d   :  { %2960 = vmatprep.subr.bf16.mxu0 %v5917_v63  ;;  %3247 = vmatprep.subr.bf16.mxu1 %v5920_v0  ;;  %v6002_v63 = vld [vmem:[#allocation8 + $0x16c] ss:$16 sps:$4 sm:$0xff]   ;;  %v5997_v0 = vld [vmem:[#allocation8 + $0x160] ss:$16 sps:$4 sm:$0xff]  }
 0x210   :  { %2961 = vmatpush1.bf16.msra.mxu0 %v5915_v1  ;;  %3248 = vmatpush1.bf16.msra.mxu1 %v5918_v2  ;;  %v6000_v1 = vld [vmem:[#allocation8 + $0x168] ss:$16 sps:$4 sm:$0xff]   ;;  %v6005_v2 = vld [vmem:[#allocation8 + $0x184] ss:$16 sps:$4 sm:$0xff]  }
 0x211   :  { %2962 = vmatprep.subr.bf16.mxu0 %v5923_v3  ;;  %3249 = vmatprep.subr.bf16.mxu1 %v5926_v4  ;;  %v6008_v3 = vld [vmem:[#allocation8 + $0x18c] ss:$16 sps:$4 sm:$0xff]   ;;  %v6003_v4 = vld [vmem:[#allocation8 + $0x180] ss:$16 sps:$4 sm:$0xff]  }
 0x214   :  { %2963 = vmatpush1.bf16.msra.mxu0 %v5921_v7  ;;  %3250 = vmatpush1.bf16.msra.mxu1 %v5924_v8  ;;  %v6014_v7 = vld [vmem:[#allocation8 + $0x1ac] ss:$16 sps:$4 sm:$0xff]   ;;  %v6009_v8 = vld [vmem:[#allocation8 + $0x1a0] ss:$16 sps:$4 sm:$0xff]  }
 0x215   :  { %5025 = vmatprep.subr.msk.bf16.mxu0 %vm2693_vm0, %v5022_v10  ;;  %5027 = vmatprep.subr.msk.bf16.mxu1 %vm2693_vm0, %v5024_v11  ;;  %v6012_v10 = vld [vmem:[#allocation8 + $0x1a8] ss:$16 sps:$4 sm:$0xff]   ;;  %v6017_v11 = vld [vmem:[#allocation8 + $0x1c4] ss:$16 sps:$4 sm:$0xff]  }
 0x218   :  { %2965 = vmatpush1.bf16.msra.mxu0 %v2695_v15  ;;  %3252 = vmatpush1.bf16.msra.mxu1 %v2701_v16  ;;  %v6023_v15 = vld [vmem:[#allocation8 + $0x1e4] ss:$16 sps:$4 sm:$0xff]   ;;  %v6026_v16 = vld [vmem:[#allocation8 + $0x1ec] ss:$16 sps:$4 sm:$0xff]  }
 0x219   :  { %4078 = vmatprep.subr.bf16.mxu0 %v5933_v17  ;;  %4160 = vmatprep.subr.bf16.mxu1 %v5936_v18  ;;  %v6021_v17 = vld [vmem:[#allocation8 + $0x1e0] ss:$16 sps:$4 sm:$0xff]   ;;  %v6024_v18 = vld [vmem:[#allocation8 + $0x1e8] ss:$16 sps:$4 sm:$0xff]  }
 0x21b   :  { %5026 = vmatmul.mubr.msk.bf16.vlgmr.msra.gmra.mrb[0].mxu0 %vm2689_vm1, %v206_v19  ;;  %5028 = vmatmul.mubr.msk.bf16.vlgmr.msra.gmra.mrb[0].mxu1 %vm2689_vm1, %v206_v19  ;;  %v6029_v19 = vld [vmem:[#allocation8 + $0x204] ss:$16 sps:$4 sm:$0xff]  }
 0x21c   :  { %4079 = vmatpush1.bf16.msra.mxu0 %v5931_v20  ;;  %4161 = vmatpush1.bf16.msra.mxu1 %v5934_v21  ;;  %v6032_v20 = vld [vmem:[#allocation8 + $0x20c] ss:$16 sps:$4 sm:$0xff]   ;;  %v621_v21 = vsub.s32 0, %v6479_v43 }
 0x21d   :  { %4080 = vmatprep.subr.bf16.mxu0 %v5939_v22  ;;  %4162 = vmatprep.subr.bf16.mxu1 %v5942_v24  ;;  %v6531_v22 = vld [vmem:[#allocation7] sm:$0xf]  ;;  %v625_v24 = vsub.s32 1, %v6479_v43 }
 0x220   :  { %4081 = vmatpush1.bf16.msra.mxu0 %v5937_v27  ;;  %4163 = vmatpush1.bf16.msra.mxu1 %v5940_v9  ;;  %v633_v27 = vsub.s32 3, %v6479_v43  ;;  %v622_v9 = vrot.slane %v6531_v22, %v621_v21 }
 0x221   :  { %4082 = vmatprep.subr.bf16.mxu0 %v5945_v28  ;;  %4164 = vmatprep.subr.bf16.mxu1 %v5948_v23  ;;  %v626_v28 = vrot.slane %v6531_v22, %v625_v24 }
 0x222   :  { %v634_v23 = vrot.slane %v6531_v22, %v633_v27 }
 0x224   :  { %4083 = vmatpush1.bf16.msra.mxu0 %v5943_v30  ;;  %4165 = vmatpush1.bf16.msra.mxu1 %v5946_v31 }
 0x225   :  { %4084 = vmatprep.subr.bf16.mxu0 %v5951_v33  ;;  %4166 = vmatprep.subr.bf16.mxu1 %v5954_v34 }
 0x228   :  { %4085 = vmatpush1.bf16.msra.mxu0 %v5949_v35  ;;  %4167 = vmatpush1.bf16.msra.mxu1 %v5952_v36 }
 0x229   :  { %4086 = vmatprep.subr.bf16.mxu0 %v5957_v37  ;;  %4168 = vmatprep.subr.bf16.mxu1 %v5960_v38 }
 0x22c   :  { %4087 = vmatpush1.bf16.msra.mxu0 %v5955_v39  ;;  %4169 = vmatpush1.bf16.msra.mxu1 %v5958_v26 }
 0x22d   :  { %4088 = vmatprep.subr.bf16.mxu0 %v5963_v41  ;;  %4170 = vmatprep.subr.bf16.mxu1 %v5966_v42 }
 0x230   :  { %4089 = vmatpush1.bf16.msra.mxu0 %v5961_v44  ;;  %4171 = vmatpush1.bf16.msra.mxu1 %v5964_v45 }
 0x231   :  { %4090 = vmatprep.subr.bf16.mxu0 %v5969_v29  ;;  %4172 = vmatprep.subr.bf16.mxu1 %v5972_v46  ;;  %v6027_v46 = vld [vmem:[#allocation8 + $0x200] ss:$16 sps:$4 sm:$0xff]  }
 0x234   :  { %4091 = vmatpush1.bf16.msra.mxu0 %v5967_v47  ;;  %4173 = vmatpush1.bf16.msra.mxu1 %v5970_v25  ;;  %v6030_v47 = vld [vmem:[#allocation8 + $0x208] ss:$16 sps:$4 sm:$0xff]  }
 0x235   :  { %4092 = vmatprep.subr.bf16.mxu0 %v5975_v49  ;;  %4174 = vmatprep.subr.bf16.mxu1 %v5978_v48  ;;  %v6035_v49 = vld [vmem:[#allocation8 + $0x224] ss:$16 sps:$4 sm:$0xff]   ;;  %v6038_v48 = vld [vmem:[#allocation8 + $0x22c] ss:$16 sps:$4 sm:$0xff]  }
 0x238   :  { %4093 = vmatpush1.bf16.msra.mxu0 %v5973_v50  ;;  %4175 = vmatpush1.bf16.msra.mxu1 %v5976_v51  ;;  %v6033_v51 = vld [vmem:[#allocation8 + $0x220] ss:$16 sps:$4 sm:$0xff]  }
 0x239   :  { %4094 = vmatprep.subr.bf16.mxu0 %v5981_v52  ;;  %4176 = vmatprep.subr.bf16.mxu1 %v5984_v53  ;;  %v6036_v52 = vld [vmem:[#allocation8 + $0x228] ss:$16 sps:$4 sm:$0xff]   ;;  %v6041_v53 = vld [vmem:[#allocation8 + $0x244] ss:$16 sps:$4 sm:$0xff]  }
 0x23c   :  { %4095 = vmatpush1.bf16.msra.mxu0 %v5979_v54  ;;  %4177 = vmatpush1.bf16.msra.mxu1 %v5982_v32  ;;  %v6044_v54 = vld [vmem:[#allocation8 + $0x24c] ss:$16 sps:$4 sm:$0xff]   ;;  %v6039_v32 = vld [vmem:[#allocation8 + $0x240] ss:$16 sps:$4 sm:$0xff]  }
 0x23d   :  { %4096 = vmatprep.subr.bf16.mxu0 %v5987_v55  ;;  %4178 = vmatprep.subr.bf16.mxu1 %v5990_v56  ;;  %v6042_v55 = vld [vmem:[#allocation8 + $0x248] ss:$16 sps:$4 sm:$0xff]   ;;  %v6047_v56 = vld [vmem:[#allocation8 + $0x264] ss:$16 sps:$4 sm:$0xff]  }
 0x240   :  { %4097 = vmatpush1.bf16.msra.mxu0 %v5985_v57  ;;  %4179 = vmatpush1.bf16.msra.mxu1 %v5988_v40  ;;  %v6050_v57 = vld [vmem:[#allocation8 + $0x26c] ss:$16 sps:$4 sm:$0xff]   ;;  %v6045_v40 = vld [vmem:[#allocation8 + $0x260] ss:$16 sps:$4 sm:$0xff]  }
 0x241   :  { %4098 = vmatprep.subr.bf16.mxu0 %v5993_v58  ;;  %4180 = vmatprep.subr.bf16.mxu1 %v5996_v59  ;;  %v6048_v58 = vld [vmem:[#allocation8 + $0x268] ss:$16 sps:$4 sm:$0xff]   ;;  %v6053_v59 = vld [vmem:[#allocation8 + $0x284] ss:$16 sps:$4 sm:$0xff]  }
 0x244   :  { %4099 = vmatpush1.bf16.msra.mxu0 %v5991_v60  ;;  %4181 = vmatpush1.bf16.msra.mxu1 %v5994_v61  ;;  %v6056_v60 = vld [vmem:[#allocation8 + $0x28c] ss:$16 sps:$4 sm:$0xff]   ;;  %v6051_v61 = vld [vmem:[#allocation8 + $0x280] ss:$16 sps:$4 sm:$0xff]  }
 0x245   :  { %4100 = vmatprep.subr.bf16.mxu0 %v5999_v62  ;;  %4182 = vmatprep.subr.bf16.mxu1 %v6002_v63  ;;  %v6054_v62 = vld [vmem:[#allocation8 + $0x288] ss:$16 sps:$4 sm:$0xff]   ;;  %v6059_v63 = vld [vmem:[#allocation8 + $0x2a4] ss:$16 sps:$4 sm:$0xff]  }
 0x248   :  { %4101 = vmatpush1.bf16.msra.mxu0 %v5997_v0  ;;  %4183 = vmatpush1.bf16.msra.mxu1 %v6000_v1  ;;  %v6062_v0 = vld [vmem:[#allocation8 + $0x2ac] ss:$16 sps:$4 sm:$0xff]   ;;  %v6057_v1 = vld [vmem:[#allocation8 + $0x2a0] ss:$16 sps:$4 sm:$0xff]  }
 0x249   :  { %4102 = vmatprep.subr.bf16.mxu0 %v6005_v2  ;;  %4184 = vmatprep.subr.bf16.mxu1 %v6008_v3  ;;  %v6060_v2 = vld [vmem:[#allocation8 + $0x2a8] ss:$16 sps:$4 sm:$0xff]   ;;  %v6065_v3 = vld [vmem:[#allocation8 + $0x2c4] ss:$16 sps:$4 sm:$0xff]  }
 0x24c   :  { %4103 = vmatpush1.bf16.msra.mxu0 %v6003_v4  ;;  %4185 = vmatpush1.bf16.msra.mxu1 %v6006_v5  ;;  %v6068_v4 = vld [vmem:[#allocation8 + $0x2cc] ss:$16 sps:$4 sm:$0xff]   ;;  %v6063_v5 = vld [vmem:[#allocation8 + $0x2c0] ss:$16 sps:$4 sm:$0xff]  }
 0x24d   :  { %4104 = vmatprep.subr.bf16.mxu0 %v6011_v6  ;;  %4186 = vmatprep.subr.bf16.mxu1 %v6014_v7  ;;  %v6066_v6 = vld [vmem:[#allocation8 + $0x2c8] ss:$16 sps:$4 sm:$0xff]   ;;  %v6071_v7 = vld [vmem:[#allocation8 + $0x2e4] ss:$16 sps:$4 sm:$0xff]  }
 0x250   :  { %4105 = vmatpush1.bf16.msra.mxu0 %v6009_v8  ;;  %4187 = vmatpush1.bf16.msra.mxu1 %v6012_v10  ;;  %v6074_v8 = vld [vmem:[#allocation8 + $0x2ec] ss:$16 sps:$4 sm:$0xff]   ;;  %v6069_v10 = vld [vmem:[#allocation8 + $0x2e0] ss:$16 sps:$4 sm:$0xff]  }
 0x251   :  { %4106 = vmatprep.subr.bf16.mxu0 %v6017_v11  ;;  %4188 = vmatprep.subr.bf16.mxu1 %v6020_v12  ;;  %v6072_v11 = vld [vmem:[#allocation8 + $0x2e8] ss:$16 sps:$4 sm:$0xff]   ;;  %v6077_v12 = vld [vmem:[#allocation8 + $0x304] ss:$16 sps:$4 sm:$0xff]  }
 0x254   :  { %4107 = vmatpush1.bf16.msra.mxu0 %v6015_v13  ;;  %4189 = vmatpush1.bf16.msra.mxu1 %v6018_v14  ;;  %v6080_v13 = vld [vmem:[#allocation8 + $0x30c] ss:$16 sps:$4 sm:$0xff]   ;;  %v6075_v14 = vld [vmem:[#allocation8 + $0x300] ss:$16 sps:$4 sm:$0xff]  }
 0x255   :  { %4108 = vmatprep.subr.bf16.mxu0 %v6023_v15  ;;  %4190 = vmatprep.subr.bf16.mxu1 %v6026_v16  ;;  %v6078_v15 = vld [vmem:[#allocation8 + $0x308] ss:$16 sps:$4 sm:$0xff]   ;;  %v6083_v16 = vld [vmem:[#allocation8 + $0x324] ss:$16 sps:$4 sm:$0xff]  }
 0x258   :  { %4109 = vmatpush1.bf16.msra.mxu0 %v6021_v17  ;;  %4191 = vmatpush1.bf16.msra.mxu1 %v6024_v18  ;;  %v6086_v17 = vld [vmem:[#allocation8 + $0x32c] ss:$16 sps:$4 sm:$0xff]   ;;  %v6081_v18 = vld [vmem:[#allocation8 + $0x320] ss:$16 sps:$4 sm:$0xff]  }
 0x259   :  { %4119 = vmatprep.subr.bf16.mxu0 %v6029_v19  ;;  %4201 = vmatprep.subr.bf16.mxu1 %v6032_v20  ;;  %v6084_v19 = vld [vmem:[#allocation8 + $0x328] ss:$16 sps:$4 sm:$0xff]   ;;  %v6089_v20 = vld [vmem:[#allocation8 + $0x344] ss:$16 sps:$4 sm:$0xff]  }
 0x2ee   :  { %v2986_v30 = vpop.f32.mrb[0].mxu0  ;;  %v6544_v31 = vpop.f32.mrb[0].mxu1 }
 0x2ef   :  { %v5234_v33 = vadd.f32 %v2986_v30, %v622_v9  ;;  %v2988_v34 = vpop.f32.mrb[1].mxu0  ;;  %v3275_v35 = vpop.f32.mrb[1].mxu1  ;;  %v6092_v9 = vld [vmem:[#allocation8 + $0x34c] ss:$16 sps:$4 sm:$0xff]   ;;  %v6095_v30 = vld [vmem:[#allocation8 + $0x364] ss:$16 sps:$4 sm:$0xff]  }
 0x2f0   :  { %v5235_v36 = vadd.f32 %v2988_v34, %v626_v28  ;;  %v5237_v37 = vadd.f32 %v3275_v35, %v634_v23  ;;  %v2990_v38 = vpop.f32.mrb[2].mxu0  ;;  %v3277_v39 = vpop.f32.mrb[2].mxu1  ;;  %v6087_v28 = vld [vmem:[#allocation8 + $0x340] ss:$16 sps:$4 sm:$0xff]   ;;  %v6090_v23 = vld [vmem:[#allocation8 + $0x348] ss:$16 sps:$4 sm:$0xff]  }
 0x2f1   :  { %v3280_v26 = vmax.f32 %v5234_v33, 0.0  ;;  %v2991_v41 = vpop.f32.mrb[3].mxu0  ;;  %v3278_v42 = vpop.f32.mrb[3].mxu1  ;;  %v6098_v33 = vld [vmem:[#allocation8 + $0x36c] ss:$16 sps:$4 sm:$0xff]  }
 0x2f2   :  { %v3281_v44 = vmax.f32 %v5235_v36, 0.0  ;;  %v3283_v45 = vmax.f32 %v5237_v37, 0.0  ;;  %v6093_v34 = vld [vmem:[#allocation8 + $0x360] ss:$16 sps:$4 sm:$0xff]   ;;  %v6096_v35 = vld [vmem:[#allocation8 + $0x368] ss:$16 sps:$4 sm:$0xff]  }
 0x2f3   :  { %v3284_v25 = vpack.c.bf16 %v3280_v26, %v3280_v26  ;;  %v6101_v36 = vld [vmem:[#allocation8 + $0x384] ss:$16 sps:$4 sm:$0xff]   ;;  %v6104_v37 = vld [vmem:[#allocation8 + $0x38c] ss:$16 sps:$4 sm:$0xff]   ;;  %v6099_v38 = vld [vmem:[#allocation8 + $0x380] ss:$16 sps:$4 sm:$0xff]  }
 0x2f4   :  { %v3285_v29 = vpack.c.bf16 %v3281_v44, %v3281_v44  ;;  %v3287_v50 = vpack.c.bf16 %v3283_v45, %v3283_v45  ;;  %v6102_v39 = vld [vmem:[#allocation8 + $0x388] ss:$16 sps:$4 sm:$0xff]   ;;  %v629_v26 = vsub.s32 2, %v6479_v43  ;;  %v6107_v41 = vld [vmem:[#allocation8 + $0x3a4] ss:$16 sps:$4 sm:$0xff]  }
 0x2f5   :  { %v6110_v42 = vld [vmem:[#allocation8 + $0x3ac] ss:$16 sps:$4 sm:$0xff]   ;;  %v6105_v44 = vld [vmem:[#allocation8 + $0x3a0] ss:$16 sps:$4 sm:$0xff]   ;;  %v6108_v45 = vld [vmem:[#allocation8 + $0x3a8] ss:$16 sps:$4 sm:$0xff]  }
 0x2f6   :  { %4110 = vmatprep.mubr.bf16.mxu0 %v3285_v29  ;;  %4192 = vmatprep.mubr.bf16.mxu1 %v3285_v29  ;;  %v630_v29 = vrot.slane %v6531_v22, %v629_v26  ;;  %v6123_v22 = vld [vmem:[#allocation11 + $0x40] sm:$0xff]  }
 0x2f7   :  { %4111 = vmatmul.mubr.bf16.vlgmr.msra.gmra.mrb[4].mxu0 %v3284_v25  ;;  %4193 = vmatmul.mubr.bf16.vlgmr.msra.gmra.mrb[4].mxu1 %v3284_v25  ;;  %v6111_v25 = vld [vmem:[#allocation8 + $0x3c0] ss:$16 sps:$4 sm:$0xff]  }
 0x2f8   :  { %4120 = vmatpush1.bf16.msra.mxu0 %v6027_v46  ;;  %4202 = vmatpush1.bf16.msra.mxu1 %v6030_v47  ;;  %v6113_v46 = vld [vmem:[#allocation8 + $0x3c4] ss:$16 sps:$4 sm:$0xff]   ;;  %v6116_v47 = vld [vmem:[#allocation8 + $0x3cc] ss:$16 sps:$4 sm:$0xff]  }
 0x2f9   :  { %4151 = vmatprep.mubr.bf16.mxu0 %v3287_v50  ;;  %4233 = vmatprep.mubr.bf16.mxu1 %v3287_v50  ;;  %v6119_v50 = vld [vmem:[#allocation8 + $0x3e4] ss:$16 sps:$4 sm:$0xff]  }
 0x2fa   :  { %4121 = vmatprep.subr.bf16.mxu0 %v6035_v49  ;;  %4203 = vmatprep.subr.bf16.mxu1 %v6038_v48  ;;  %v6114_v49 = vld [vmem:[#allocation8 + $0x3c8] ss:$16 sps:$4 sm:$0xff]   ;;  %v5236_v48 = vadd.f32 %v6544_v31, %v630_v29  ;;  %v6127_v31 = vld [vmem:[#allocation11 + $0x48] sm:$0xff]  }
 0x2fc   :  { %4122 = vmatpush1.bf16.msra.mxu0 %v6033_v51  ;;  %4204 = vmatpush1.bf16.msra.mxu1 %v6036_v52  ;;  %v6122_v51 = vld [vmem:[#allocation8 + $0x3ec] ss:$16 sps:$4 sm:$0xff]   ;;  %v6117_v52 = vld [vmem:[#allocation8 + $0x3e0] ss:$16 sps:$4 sm:$0xff]  }
 0x2fd   :  { %4123 = vmatprep.subr.bf16.mxu0 %v6041_v53  ;;  %4205 = vmatprep.subr.bf16.mxu1 %v6044_v54  ;;  %v6120_v53 = vld [vmem:[#allocation8 + $0x3e8] ss:$16 sps:$4 sm:$0xff]   ;;  %v3282_v54 = vmax.f32 %v5236_v48, 0.0 }
 0x300   :  { %4124 = vmatpush1.bf16.msra.mxu0 %v6039_v32  ;;  %4206 = vmatpush1.bf16.msra.mxu1 %v6042_v55  ;;  %v6124_v32 = vld [vmem:[#allocation11 + $0xc0] sm:$0xff]  }
 0x301   :  { %4125 = vmatprep.subr.bf16.mxu0 %v6047_v56  ;;  %4207 = vmatprep.subr.bf16.mxu1 %v6050_v57  ;;  %v6125_v55 = vld [vmem:[#allocation11] sm:$0xff]   ;;  %v3286_v57 = vpack.c.bf16 %v3282_v54, %v3282_v54 }
 0x302   :  { %v6126_v56 = vld [vmem:[#allocation11 + $0x80] sm:$0xff]  }
 0x304   :  { %4126 = vmatpush1.bf16.msra.mxu0 %v6045_v40  ;;  %4208 = vmatpush1.bf16.msra.mxu1 %v6048_v58  ;;  %v6128_v40 = vld [vmem:[#allocation11 + $0xc8] sm:$0xff]  }
 0x305   :  { %4127 = vmatprep.subr.bf16.mxu0 %v6053_v59  ;;  %4209 = vmatprep.subr.bf16.mxu1 %v6056_v60  ;;  %v6129_v58 = vld [vmem:[#allocation11 + $0x8] sm:$0xff]   ;;  %v6131_v60 = vld [vmem:[#allocation11 + $0x50] sm:$0xff]  }
 0x306   :  { %v6130_v59 = vld [vmem:[#allocation11 + $0x88] sm:$0xff]  }
 0x308   :  { %4128 = vmatpush1.bf16.msra.mxu0 %v6051_v61  ;;  %4210 = vmatpush1.bf16.msra.mxu1 %v6054_v62  ;;  %v6132_v61 = vld [vmem:[#allocation11 + $0xd0] sm:$0xff]  }
 0x309   :  { %4129 = vmatprep.subr.bf16.mxu0 %v6059_v63  ;;  %4211 = vmatprep.subr.bf16.mxu1 %v6062_v0  ;;  %v6133_v62 = vld [vmem:[#allocation11 + $0x10] sm:$0xff]   ;;  %v6135_v0 = vld [vmem:[#allocation11 + $0x58] sm:$0xff]  }
 0x30a   :  { %v6134_v63 = vld [vmem:[#allocation11 + $0x90] sm:$0xff]  }
 0x30c   :  { %4130 = vmatpush1.bf16.msra.mxu0 %v6057_v1  ;;  %4212 = vmatpush1.bf16.msra.mxu1 %v6060_v2  ;;  %v6136_v1 = vld [vmem:[#allocation11 + $0xd8] sm:$0xff]  }
 0x30d   :  { %4131 = vmatprep.subr.bf16.mxu0 %v6065_v3  ;;  %4213 = vmatprep.subr.bf16.mxu1 %v6068_v4  ;;  %v6137_v2 = vld [vmem:[#allocation11 + $0x18] sm:$0xff]   ;;  %v6139_v4 = vld [vmem:[#allocation11 + $0x60] sm:$0xff]  }
 0x30e   :  { %v6138_v3 = vld [vmem:[#allocation11 + $0x98] sm:$0xff]  }
 0x310   :  { %4132 = vmatpush1.bf16.msra.mxu0 %v6063_v5  ;;  %4214 = vmatpush1.bf16.msra.mxu1 %v6066_v6  ;;  %v6140_v5 = vld [vmem:[#allocation11 + $0xe0] sm:$0xff]  }
 0x311   :  { %4133 = vmatprep.subr.bf16.mxu0 %v6071_v7  ;;  %4215 = vmatprep.subr.bf16.mxu1 %v6074_v8  ;;  %v6141_v6 = vld [vmem:[#allocation11 + $0x20] sm:$0xff]   ;;  %v6143_v8 = vld [vmem:[#allocation11 + $0x68] sm:$0xff]  }
 0x312   :  { %v6142_v7 = vld [vmem:[#allocation11 + $0xa0] sm:$0xff]  }
 0x314   :  { %4134 = vmatpush1.bf16.msra.mxu0 %v6069_v10  ;;  %4216 = vmatpush1.bf16.msra.mxu1 %v6072_v11  ;;  %v6144_v10 = vld [vmem:[#allocation11 + $0xe8] sm:$0xff]  }
 0x315   :  { %4135 = vmatprep.subr.bf16.mxu0 %v6077_v12  ;;  %4217 = vmatprep.subr.bf16.mxu1 %v6080_v13  ;;  %v6145_v11 = vld [vmem:[#allocation11 + $0x28] sm:$0xff]   ;;  %v6147_v13 = vld [vmem:[#allocation11 + $0x70] sm:$0xff]  }
 0x316   :  { %v6146_v12 = vld [vmem:[#allocation11 + $0xa8] sm:$0xff]  }
 0x318   :  { %4136 = vmatpush1.bf16.msra.mxu0 %v6075_v14  ;;  %4218 = vmatpush1.bf16.msra.mxu1 %v6078_v15  ;;  %v6148_v14 = vld [vmem:[#allocation11 + $0xf0] sm:$0xff]  }
 0x319   :  { %4137 = vmatprep.subr.bf16.mxu0 %v6083_v16  ;;  %4219 = vmatprep.subr.bf16.mxu1 %v6086_v17  ;;  %v6149_v15 = vld [vmem:[#allocation11 + $0x30] sm:$0xff]   ;;  %v6151_v17 = vld [vmem:[#allocation11 + $0x78] sm:$0xff]  }
 0x31a   :  { %v6150_v16 = vld [vmem:[#allocation11 + $0xb0] sm:$0xff]  }
 0x31c   :  { %4138 = vmatpush1.bf16.msra.mxu0 %v6081_v18  ;;  %4220 = vmatpush1.bf16.msra.mxu1 %v6084_v19  ;;  %v6152_v18 = vld [vmem:[#allocation11 + $0xf8] sm:$0xff]  }
 0x31d   :  { %4139 = vmatprep.subr.bf16.mxu0 %v6089_v20  ;;  %4221 = vmatprep.subr.bf16.mxu1 %v6092_v9  ;;  %v6153_v19 = vld [vmem:[#allocation11 + $0x38] sm:$0xff]  }
 0x31e   :  { %v6154_v20 = vld [vmem:[#allocation11 + $0xb8] sm:$0xff]  }
 0x31f   :  { %v3416_v9 = vld [vmem:[#allocation10] sm:$0xf] }
 0x320   :  { %4140 = vmatpush1.bf16.msra.mxu0 %v6087_v28  ;;  %4222 = vmatpush1.bf16.msra.mxu1 %v6090_v23  ;;  %v3421_v28 = vrot.slane %v3416_v9, %v621_v21  ;;  %v3429_v23 = vrot.slane %v3416_v9, %v629_v26 }
 0x321   :  { %4141 = vmatprep.subr.bf16.mxu0 %v6095_v30  ;;  %4223 = vmatprep.subr.bf16.mxu1 %v6098_v33  ;;  %v3425_v30 = vrot.slane %v3416_v9, %v625_v24  ;;  %v3433_v33 = vrot.slane %v3416_v9, %v633_v27 }
 0x324   :  { %4142 = vmatpush1.bf16.msra.mxu0 %v6093_v34  ;;  %4224 = vmatpush1.bf16.msra.mxu1 %v6096_v35 }
 0x325   :  { %4143 = vmatprep.subr.bf16.mxu0 %v6101_v36  ;;  %4225 = vmatprep.subr.bf16.mxu1 %v6104_v37 }
 0x328   :  { %4144 = vmatpush1.bf16.msra.mxu0 %v6099_v38  ;;  %4226 = vmatpush1.bf16.msra.mxu1 %v6102_v39 }
 0x329   :  { %4145 = vmatprep.subr.bf16.mxu0 %v6107_v41  ;;  %4227 = vmatprep.subr.bf16.mxu1 %v6110_v42 }
 0x32c   :  { %4146 = vmatpush1.bf16.msra.mxu0 %v6105_v44  ;;  %4228 = vmatpush1.bf16.msra.mxu1 %v6108_v45 }
 0x32d   :  { %4147 = vmatprep.subr.bf16.mxu0 %v6113_v46  ;;  %4229 = vmatprep.subr.bf16.mxu1 %v6116_v47 }
 0x330   :  { %4148 = vmatpush1.bf16.msra.mxu0 %v6111_v25  ;;  %4230 = vmatpush1.bf16.msra.mxu1 %v6114_v49 }
 0x331   :  { %4149 = vmatprep.subr.bf16.mxu0 %v6119_v50  ;;  %4231 = vmatprep.subr.bf16.mxu1 %v6122_v51  ;;  %v5157_v51 = vld [vmem:[#allocation13] ss:$0 sm:$0xff] }
 0x334   :  { %4150 = vmatpush1.bf16.msra.mxu0 %v6117_v52  ;;  %4232 = vmatpush1.bf16.msra.mxu1 %v6120_v53 }
 0x335   :  { %5190 = vmatprep.subr.bf16.mxu0 %v6123_v22  ;;  %5212 = vmatprep.subr.bf16.mxu1 %v6124_v32 }
 0x337   :  { %4152 = vmatmul.mubr.bf16.vlgmr.msra.gmra.mrb[4].mxu0 %v3286_v57  ;;  %4234 = vmatmul.mubr.bf16.vlgmr.msra.gmra.mrb[4].mxu1 %v3286_v57 }
 0x338   :  { %5191 = vmatpush3.bf16.msra.mxu0 %v6125_v55  ;;  %5213 = vmatpush3.bf16.msra.mxu1 %v6126_v56 }
 0x339   :  { %5192 = vmatprep.subr.bf16.mxu0 %v6127_v31  ;;  %5214 = vmatprep.subr.bf16.mxu1 %v6128_v40 }
 0x33c   :  { %5193 = vmatpush3.bf16.msra.mxu0 %v6129_v58  ;;  %5215 = vmatpush3.bf16.msra.mxu1 %v6130_v59 }
 0x33d   :  { %5194 = vmatprep.subr.bf16.mxu0 %v6131_v60  ;;  %5216 = vmatprep.subr.bf16.mxu1 %v6132_v61 }
 0x340   :  { %5195 = vmatpush3.bf16.msra.mxu0 %v6133_v62  ;;  %5217 = vmatpush3.bf16.msra.mxu1 %v6134_v63 }
 0x341   :  { %5196 = vmatprep.subr.bf16.mxu0 %v6135_v0  ;;  %5218 = vmatprep.subr.bf16.mxu1 %v6136_v1 }
 0x344   :  { %5197 = vmatpush3.bf16.msra.mxu0 %v6137_v2  ;;  %5219 = vmatpush3.bf16.msra.mxu1 %v6138_v3 }
 0x345   :  { %5198 = vmatprep.subr.bf16.mxu0 %v6139_v4  ;;  %5220 = vmatprep.subr.bf16.mxu1 %v6140_v5 }
 0x348   :  { %5199 = vmatpush3.bf16.msra.mxu0 %v6141_v6  ;;  %5221 = vmatpush3.bf16.msra.mxu1 %v6142_v7 }
 0x349   :  { %5200 = vmatprep.subr.bf16.mxu0 %v6143_v8  ;;  %5222 = vmatprep.subr.bf16.mxu1 %v6144_v10 }
 0x34c   :  { %5201 = vmatpush3.bf16.msra.mxu0 %v6145_v11  ;;  %5223 = vmatpush3.bf16.msra.mxu1 %v6146_v12 }
 0x34d   :  { %5202 = vmatprep.subr.bf16.mxu0 %v6147_v13  ;;  %5224 = vmatprep.subr.bf16.mxu1 %v6148_v14 }
 0x350   :  { %5203 = vmatpush3.bf16.msra.mxu0 %v6149_v15  ;;  %5225 = vmatpush3.bf16.msra.mxu1 %v6150_v16 }
 0x351   :  { %5204 = vmatprep.subr.bf16.mxu0 %v6151_v17  ;;  %5226 = vmatprep.subr.bf16.mxu1 %v6152_v18 }
 0x354   :  { %5205 = vmatpush3.bf16.msra.mxu0 %v6153_v19  ;;  %5227 = vmatpush3.bf16.msra.mxu1 %v6154_v20 }
 0x40a   :  { %v4153_v34 = vpop.f32.mrb[4].mxu0  ;;  %v4235_v35 = vpop.f32.mrb[4].mxu1 }
 0x40b   :  { %v5238_v36 = vadd.f32 %v4153_v34, %v3421_v28  ;;  %v5240_v37 = vadd.f32 %v4235_v35, %v3429_v23  ;;  %v4155_v38 = vpop.f32.mrb[5].mxu0  ;;  %v4237_v39 = vpop.f32.mrb[5].mxu1 }
 0x40c   :  { %v5239_v41 = vadd.f32 %v4155_v38, %v3425_v30  ;;  %v5241_v42 = vadd.f32 %v4237_v39, %v3433_v33  ;;  %v4157_v44 = vpop.f32.mrb[6].mxu0  ;;  %v4239_v45 = vpop.f32.mrb[6].mxu1 }
 0x40d   :  { %v4242_v21 = vmax.f32 %v5238_v36, 0.0  ;;  %v4244_v29 = vmax.f32 %v5240_v37, 0.0  ;;  %v4158_v46 = vpop.f32.mrb[7].mxu0  ;;  %v4240_v26 = vpop.f32.mrb[7].mxu1 }
 0x40e   :  { %v4243_v47 = vmax.f32 %v5239_v41, 0.0  ;;  %v4245_v25 = vmax.f32 %v5241_v42, 0.0 }
 0x40f   :  { %v4246_v43 = vpack.c.bf16 %v4242_v21, %v4242_v21  ;;  %v4248_v27 = vpack.c.bf16 %v4244_v29, %v4244_v29 }
 0x410   :  { %v4247_v24 = vpack.c.bf16 %v4243_v47, %v4243_v47  ;;  %v4249_v49 = vpack.c.bf16 %v4245_v25, %v4245_v25 }
 0x412   :  { %4545 = vmatprep.mubr.bf16.mxu0 %v4247_v24  ;;  %4585 = vmatprep.mubr.bf16.mxu1 %v4249_v49 }
 0x413   :  { %4546 = vmatmul.mubr.bf16.vlgmr.msra.gmra.mrb[8].mxu0 %v4246_v43  ;;  %4586 = vmatmul.mubr.bf16.vlgmr.msra.gmra.mrb[8].mxu1 %v4248_v27 }
 0x4e6   :  { %v5206_v48 = vpop.f32.mrb[8].mxu0  ;;  %v5228_v50 = vpop.f32.mrb[8].mxu1 }
 0x4e7   :  { %v5207_v52 = vpop.f32.mrb[9].mxu0  ;;  %v5229_v53 = vpop.f32.mrb[9].mxu1 }
 0x4e8   :  { %v5208_v54 = vadd.f32 %v5207_v52, %v5206_v48  ;;  %v5230_v22 = vadd.f32 %v5229_v53, %v5228_v50  ;;  %v5209_v32 = vpop.f32.mrb[10].mxu0  ;;  %v5231_v55 = vpop.f32.mrb[10].mxu1 }
 0x4e9   :  { %v5210_v56 = vpop.f32.mrb[11].mxu0  ;;  %v5232_v57 = vpop.f32.mrb[11].mxu1 }
 0x4ea   :  { %v4548_v31 = vadd.f32 %v5208_v54, %v5157_v51 }
 0x4ec   :  { %v4588_v40 = vadd.f32 %v5230_v22, %v4548_v31 }
 0x4ee   :  { %4593 = vst [vmem:[#allocation14] sm:$0x3] %v4588_v40 }
 0x4ef   :  { %6320 = shalt.err (!%p6317_p4)
}
 0x4f0   :  { %s6321_s11 = scalar_lea.hbm %s6578_s7, 32 }
 0x4f1   :  { %p6322_p5 = scmp.ne.s32.totalorder %s6578_s7, %s6321_s11  ;;  %p6325_p6 = scmp.lt.u32.totalorder %s6321_s11, %s6578_s7 }
 0x4f3   :  { %p6327_p7 = pnand %p6325_p6, %p6322_p5 }
 0x4f5   :  { %6330 = shalt.err (!%p6327_p7)
}
 0x4f6   :  { %4603 = dma.vmem_to_hbm [thread:$0]  %s4601_s13, 32, %s6578_s7, [#allocation4]  }
 0x4f7   :  { %6339 = dma.done.wait [#allocation4], 32  }
 0x4f8   :  { %6340 = vsyncadd [#allocation4], 4294967264 }
 0x4f9   :  { %4607 = vsyncpa [#allocation3], 1 }
 0x4fa   :  { %4608 = vsyncpa [#allocation6], 1 }
 0x4fb   :  { %4609 = vsyncpa [#allocation9], 1 }
 0x4fc   :  { %4610 = vsyncpa [#allocation12], 1 }
 0x4fd   :  { %4611 = vsyncpa [#allocation4], 1 }

</bundles_post_ra>
